<compile_context>
chip_gen: v7x
topology: tpu7x:2x2x1
jax: 0.10.0
libtpu: 0.0.40
codegen_flags: <defaults>
</compile_context>

<pallas_src>
import functools

import jax
import jax.numpy as jnp
from jax import lax
from jax.experimental import pallas as pl
from jax.experimental.pallas import tpu as pltpu

EPS = 1e-5
KH, KW = 8, 5          # conv kernel
STRIDE_W = 2           # int(5 / 2)
PAD_W = 2              # round(5 / 4 + 0.5)
C_OUT = 192
POOL_W = 5             # MaxPool2d((1, 5))
ADAPT_W = 4            # AdaptiveAvgPool2d((1, 4))
NUM_CLASSES = 8

# lane-aligned padded sizes used inside the kernel (K is intentionally NOT padded)
CP = 256               # conv channels 192 -> 256 (lane-dense N / bin stride)
NP = 128               # classes 8 -> 128 (lane-dense output store)


def _simplenet_kernel(patches_ref, wconv_ref, bias_ref, wfc_ref, bfc_ref,
                      out_ref, *, bb, h_out, w_m, bw):
    """One grid step = bb samples.  Patch rows are ordered (j, h, wb, p, s)."""
    nhw = h_out * w_m * bb                    # rows per maxpool phase
    w = wconv_ref[...]                        # (40, 256)

    # --- Conv2d split by maxpool phase: 5 (nhw,40)@(40,256) MXU dots with a
    #     running max (no full-conv VMEM store/reload).  Per-channel bias
    #     (folded BN) and ReLU commute with max -> applied once afterwards. --
    mx = jnp.dot(patches_ref[0:nhw, :], w, preferred_element_type=jnp.float32)
    for j in range(1, POOL_W):
        yj = jnp.dot(patches_ref[j * nhw:(j + 1) * nhw, :], w,
                     preferred_element_type=jnp.float32)
        mx = jnp.maximum(mx, yj)
    mp = jnp.maximum(mx + bias_ref[...], 0.0)          # (nhw, CP)

    # --- AdaptiveAvgPool2d((1,4)) numerator + Linear: for each output bin wb,
    #     sum the h_out*bw contiguous (bb, CP) slabs (rows ordered
    #     (h, wb, p, s)) and feed an accumulated (bb,CP)@(CP,NP) MXU dot.
    #     The 1/count averaging factor is folded into wfc host-side. ---------
    fc = None
    for wb in range(ADAPT_W):
        acc = None
        for h in range(h_out):
            for p in range(bw):
                start = (h * w_m + wb * bw + p) * bb   # multiple of bb (>=8)
                slab = mp[start:start + bb, :]
                acc = slab if acc is None else acc + slab
        d = jnp.dot(acc, wfc_ref[wb * CP:(wb + 1) * CP, :],
                    preferred_element_type=jnp.float32)
        fc = d if fc is None else fc + d
    out_ref[...] = fc + bfc_ref[...]


def simplenet_forward(x, params):
    B, c_in, H, W = x.shape
    assert c_in == 1
    h_out = H - KH + 1
    w_c = (W + 2 * PAD_W - KW) // STRIDE_W + 1
    w_m = w_c // POOL_W                      # maxpool output width (floor)
    assert h_out >= 1 and w_m >= ADAPT_W
    # equal-size adaptive-pool bins only (holds for the intended shapes)
    assert w_m % ADAPT_W == 0, "adaptive pool bins must be equal-sized"
    bw = w_m // ADAPT_W
    w_used = w_m * POOL_W                    # conv columns that survive pooling
    P_used = h_out * w_used                  # conv positions per sample
    K = KH * KW                              # 40 — kept unpadded

    # --- samples per grid step: one step on single-TC chips (v5e/v6e),
    #     two "parallel" steps on two-TC chips (v7x). ------------------------
    try:
        kind = jax.devices()[0].device_kind.lower()
    except Exception:  # pragma: no cover
        kind = ""
    two_tc = ("v7" in kind) or ("7x" in kind)
    BB = B
    if two_tc and B % 2 == 0 and ((B // 2) * P_used) % 8 == 0:
        BB = B // 2
    NB = B // BB

    w_conv, bn_gamma, bn_beta, bn_mean, bn_var, w_fc, b_fc = params

    # --- fold eval-mode BatchNorm into conv weight + bias (host-side) -------
    scale = bn_gamma * lax.rsqrt(bn_var + EPS)                     # (192,)
    w_mat = w_conv.reshape(C_OUT, K).T * scale[None, :]            # (40, 192)
    w_mat = jnp.pad(w_mat, ((0, 0), (0, CP - C_OUT)))              # (40, 256)
    bias = jnp.pad(bn_beta - bn_mean * scale, (0, CP - C_OUT)).reshape(1, CP)

    # --- FC weight: per-bin (CP, NP) blocks, 1/count folded in, zero-padded -
    inv_cnt = 1.0 / (h_out * bw)
    wfc3 = (w_fc.reshape(NUM_CLASSES, C_OUT, ADAPT_W)
                 .transpose(2, 1, 0) * inv_cnt)                    # (4,192,8)
    wfc3 = jnp.pad(wfc3, ((0, 0), (0, CP - C_OUT), (0, NP - NUM_CLASSES)))
    wfc2 = wfc3.reshape(ADAPT_W * CP, NP)                          # (1024, 128)
    bfc = jnp.pad(b_fc, (0, NP - NUM_CLASSES)).reshape(1, NP)

    # --- im2col built directly in maxpool-phase-major order -----------------
    # conv column w = m*POOL_W + j with m = wb*bw + p_in; for a fixed phase j
    # and tap (kh,kw) the needed input columns form one strided slice, so the
    # only remaining reorder is moving the sample axis innermost per block.
    x_p = jnp.pad(x, ((0, 0), (0, 0), (0, 0), (PAD_W, PAD_W)))
    phases = []
    for j in range(POOL_W):
        taps = []
        for kh in range(KH):
            for kw in range(KW):
                start = kw + STRIDE_W * j
                stop = start + STRIDE_W * POOL_W * (w_m - 1) + 1
                taps.append(
                    x_p[:, 0, kh:kh + h_out, start:stop:STRIDE_W * POOL_W])
        phases.append(jnp.stack(taps, axis=-1))        # (B, h_out, w_m, K)
    patches = jnp.stack(phases, axis=1)                # (B, 5, h_out, w_m, K)
    patches = patches.reshape(NB, BB, POOL_W, h_out, w_m, K)
    patches = patches.transpose(0, 2, 3, 4, 1, 5)      # (nb, j, h, m, s, k)
    patches2 = patches.reshape(B * P_used, K)          # rows: (j, h, wb, p, s)

    kernel = functools.partial(_simplenet_kernel,
                               bb=BB, h_out=h_out, w_m=w_m, bw=bw)

    flops = 2 * B * P_used * K * C_OUT + 2 * B * ADAPT_W * C_OUT * NUM_CLASSES
    bytes_accessed = 4 * (patches2.size + w_mat.size + bias.size
                          + wfc2.size + bfc.size + B * NP)

    out_padded = pl.pallas_call(
        kernel,
        out_shape=jax.ShapeDtypeStruct((B, NP), jnp.float32),
        grid_spec=pltpu.PrefetchScalarGridSpec(
            num_scalar_prefetch=0,
            grid=(NB,),
            in_specs=[
                pl.BlockSpec((BB * P_used, K), lambda b: (b, 0)),    # patches
                pl.BlockSpec((K, CP), lambda b: (0, 0)),             # conv w
                pl.BlockSpec((1, CP), lambda b: (0, 0)),             # conv bias
                pl.BlockSpec((ADAPT_W * CP, NP), lambda b: (0, 0)),  # fc w
                pl.BlockSpec((1, NP), lambda b: (0, 0)),             # fc bias
            ],
            out_specs=pl.BlockSpec((BB, NP), lambda b: (b, 0)),
        ),
        compiler_params=pltpu.CompilerParams(
            dimension_semantics=("parallel",)),
        cost_estimate=pl.CostEstimate(flops=flops, transcendentals=0,
                                      bytes_accessed=bytes_accessed),
    )(patches2, w_mat, bias, wfc2, bfc)

    return out_padded[:, :NUM_CLASSES]


def init_params(key):
    k = jax.random.split(key, 6)
    w_conv = jax.random.normal(k[0], (C_OUT, 1, KH, KW), jnp.float32)
    w_conv = w_conv * (1.0 / (KH * KW) ** 0.5)
    bn_gamma = 1.0 + 0.1 * jax.random.normal(k[1], (C_OUT,), jnp.float32)
    bn_beta = 0.1 * jax.random.normal(k[2], (C_OUT,), jnp.float32)
    bn_mean = 0.1 * jax.random.normal(k[3], (C_OUT,), jnp.float32)
    bn_var = 1.0 + 0.1 * jnp.abs(jax.random.normal(k[4], (C_OUT,), jnp.float32))
    w_fc = jax.random.normal(k[5], (NUM_CLASSES, C_OUT * ADAPT_W), jnp.float32)
    w_fc = w_fc * (1.0 / (C_OUT * ADAPT_W) ** 0.5)
    b_fc = jnp.linspace(-0.1, 0.1, NUM_CLASSES, dtype=jnp.float32)
    return (w_conv, bn_gamma, bn_beta, bn_mean, bn_var, w_fc, b_fc)


def reference_forward(x, params):
    """Plain-JAX reference replicating the PyTorch forward (eval BN)."""
    w_conv, gamma, beta, mean, var, w_fc, b_fc = params
    conv = lax.conv_general_dilated(
        x, w_conv, window_strides=(1, STRIDE_W),
        padding=((0, 0), (PAD_W, PAD_W)),
        dimension_numbers=("NCHW", "OIHW", "NCHW"))
    inv = lax.rsqrt(var + EPS)
    y = ((conv - mean[None, :, None, None]) * inv[None, :, None, None]
         * gamma[None, :, None, None] + beta[None, :, None, None])
    y = jnp.maximum(y, 0.0)
    y = lax.reduce_window(y, -jnp.inf, lax.max,
                          (1, 1, 1, POOL_W), (1, 1, 1, POOL_W), "VALID")
    B, C, Hm, Wm = y.shape
    outs = []
    for i in range(ADAPT_W):
        s = (i * Wm) // ADAPT_W
        e = -((-(i + 1) * Wm) // ADAPT_W)
        outs.append(jnp.mean(y[:, :, :, s:e], axis=(2, 3)))
    pooled = jnp.stack(outs, axis=-1)                        # (B, 192, 4)
    flat = pooled.reshape(B, -1)                             # c*4 + w order
    return flat @ w_fc.T + b_fc


if __name__ == "__main__":
    key = jax.random.PRNGKey(0)
    kx, kp = jax.random.split(key)
    # NCHW input; H=8 matches the (8,5) kernel height, W=80 gives conv width
    # 40 -> maxpool width 8 -> adaptive avg pool width 4.  B=16 => one grid
    # step of 16 samples on v5e/v6e, two parallel steps of 8 on v7x.
    x = jax.random.normal(kx, (16, 1, 8, 80), jnp.float32)
    params = init_params(kp)

    out = simplenet_forward(x, params)
    out = jax.block_until_ready(out)

    ref = reference_forward(x, params)
    assert out.shape == (16, NUM_CLASSES), out.shape
    assert jnp.allclose(out, ref, rtol=1e-3, atol=1e-3), (out, ref)
    print("KERNEL_OK")
</pallas_src>

<mosaic_0001>
module attributes {stable_mosaic.version = 11 : i64} {
  func.func @_simplenet_kernel(%arg0: i32, %arg1: memref<640x40xf32, #tpu.memory_space<vmem>>, %arg2: memref<40x256xf32, #tpu.memory_space<vmem>>, %arg3: memref<1x256xf32, #tpu.memory_space<vmem>>, %arg4: memref<1024x128xf32, #tpu.memory_space<vmem>>, %arg5: memref<1x128xf32, #tpu.memory_space<vmem>>, %arg6: memref<16x128xf32, #tpu.memory_space<vmem>>) attributes {dimension_semantics = [#tpu.dimension_semantics<parallel>], iteration_bounds = array<i64: 1>, scalar_prefetch = 0 : i64, scratch_operands = 0 : i64, tpu.core_type = #tpu.core_type<tc>, window_params = [{transform_indices = @transform_0, window_bounds = array<i64: 640, 40>}, {pipeline_mode = #tpu.pipeline_mode<synchronous>, transform_indices = @transform_1, window_bounds = array<i64: 40, 256>}, {pipeline_mode = #tpu.pipeline_mode<synchronous>, transform_indices = @transform_2, window_bounds = array<i64: 1, 256>}, {pipeline_mode = #tpu.pipeline_mode<synchronous>, transform_indices = @transform_3, window_bounds = array<i64: 1024, 128>}, {pipeline_mode = #tpu.pipeline_mode<synchronous>, transform_indices = @transform_4, window_bounds = array<i64: 1, 128>}, {transform_indices = @transform_5, window_bounds = array<i64: 16, 128>}]} {
    %c0 = arith.constant 0 : index
    %c0_0 = arith.constant 0 : index
    %0 = vector.load %arg2[%c0, %c0_0] : memref<40x256xf32, #tpu.memory_space<vmem>>, vector<40x256xf32>
    %c0_1 = arith.constant 0 : index
    %c0_2 = arith.constant 0 : index
    %1 = vector.load %arg1[%c0_1, %c0_2] : memref<640x40xf32, #tpu.memory_space<vmem>>, vector<128x40xf32>
    %cst = arith.constant dense<0.000000e+00> : vector<128x256xf32>
    %2 = tpu.matmul %1, %0, %cst {dimension_numbers = #tpu.dot_dimension_numbers<[1], [0], [0], [1], [0, 0, 1, 1], [], []>} : vector<128x40xf32>, vector<40x256xf32>, vector<128x256xf32> -> vector<128x256xf32>
    %c128 = arith.constant 128 : index
    %c0_3 = arith.constant 0 : index
    %3 = vector.load %arg1[%c128, %c0_3] : memref<640x40xf32, #tpu.memory_space<vmem>>, vector<128x40xf32>
    %cst_4 = arith.constant dense<0.000000e+00> : vector<128x256xf32>
    %4 = tpu.matmul %3, %0, %cst_4 {dimension_numbers = #tpu.dot_dimension_numbers<[1], [0], [0], [1], [0, 0, 1, 1], [], []>} : vector<128x40xf32>, vector<40x256xf32>, vector<128x256xf32> -> vector<128x256xf32>
    %5 = arith.maximumf %2, %4 : vector<128x256xf32>
    %c256 = arith.constant 256 : index
    %c0_5 = arith.constant 0 : index
    %6 = vector.load %arg1[%c256, %c0_5] : memref<640x40xf32, #tpu.memory_space<vmem>>, vector<128x40xf32>
    %cst_6 = arith.constant dense<0.000000e+00> : vector<128x256xf32>
    %7 = tpu.matmul %6, %0, %cst_6 {dimension_numbers = #tpu.dot_dimension_numbers<[1], [0], [0], [1], [0, 0, 1, 1], [], []>} : vector<128x40xf32>, vector<40x256xf32>, vector<128x256xf32> -> vector<128x256xf32>
    %8 = arith.maximumf %5, %7 : vector<128x256xf32>
    %c384 = arith.constant 384 : index
    %c0_7 = arith.constant 0 : index
    %9 = vector.load %arg1[%c384, %c0_7] : memref<640x40xf32, #tpu.memory_space<vmem>>, vector<128x40xf32>
    %cst_8 = arith.constant dense<0.000000e+00> : vector<128x256xf32>
    %10 = tpu.matmul %9, %0, %cst_8 {dimension_numbers = #tpu.dot_dimension_numbers<[1], [0], [0], [1], [0, 0, 1, 1], [], []>} : vector<128x40xf32>, vector<40x256xf32>, vector<128x256xf32> -> vector<128x256xf32>
    %11 = arith.maximumf %8, %10 : vector<128x256xf32>
    %c512 = arith.constant 512 : index
    %c0_9 = arith.constant 0 : index
    %12 = vector.load %arg1[%c512, %c0_9] : memref<640x40xf32, #tpu.memory_space<vmem>>, vector<128x40xf32>
    %cst_10 = arith.constant dense<0.000000e+00> : vector<128x256xf32>
    %13 = tpu.matmul %12, %0, %cst_10 {dimension_numbers = #tpu.dot_dimension_numbers<[1], [0], [0], [1], [0, 0, 1, 1], [], []>} : vector<128x40xf32>, vector<40x256xf32>, vector<128x256xf32> -> vector<128x256xf32>
    %14 = arith.maximumf %11, %13 : vector<128x256xf32>
    %c0_11 = arith.constant 0 : index
    %c0_12 = arith.constant 0 : index
    %15 = vector.load %arg3[%c0_11, %c0_12] : memref<1x256xf32, #tpu.memory_space<vmem>>, vector<1x256xf32>
    %16 = vector.broadcast %15 : vector<1x256xf32> to vector<128x256xf32>
    %17 = arith.addf %14, %16 : vector<128x256xf32>
    %cst_13 = arith.constant 0.000000e+00 : f32
    %18 = vector.broadcast %cst_13 : f32 to vector<128x256xf32>
    %19 = arith.maximumf %17, %18 : vector<128x256xf32>
    %20 = vector.extract_strided_slice %19 {offsets = [0, 0], sizes = [16, 256], strides = [1, 1]} : vector<128x256xf32> to vector<16x256xf32>
    %21 = vector.extract_strided_slice %19 {offsets = [16, 0], sizes = [16, 256], strides = [1, 1]} : vector<128x256xf32> to vector<16x256xf32>
    %22 = arith.addf %20, %21 : vector<16x256xf32>
    %c0_14 = arith.constant 0 : index
    %c0_15 = arith.constant 0 : index
    %23 = vector.load %arg4[%c0_14, %c0_15] : memref<1024x128xf32, #tpu.memory_space<vmem>>, vector<256x128xf32>
    %cst_16 = arith.constant dense<0.000000e+00> : vector<16x128xf32>
    %24 = tpu.matmul %22, %23, %cst_16 {dimension_numbers = #tpu.dot_dimension_numbers<[1], [0], [0], [1], [0, 0, 1, 1], [], []>} : vector<16x256xf32>, vector<256x128xf32>, vector<16x128xf32> -> vector<16x128xf32>
    %25 = vector.extract_strided_slice %19 {offsets = [32, 0], sizes = [16, 256], strides = [1, 1]} : vector<128x256xf32> to vector<16x256xf32>
    %26 = vector.extract_strided_slice %19 {offsets = [48, 0], sizes = [16, 256], strides = [1, 1]} : vector<128x256xf32> to vector<16x256xf32>
    %27 = arith.addf %25, %26 : vector<16x256xf32>
    %c256_17 = arith.constant 256 : index
    %c0_18 = arith.constant 0 : index
    %28 = vector.load %arg4[%c256_17, %c0_18] : memref<1024x128xf32, #tpu.memory_space<vmem>>, vector<256x128xf32>
    %cst_19 = arith.constant dense<0.000000e+00> : vector<16x128xf32>
    %29 = tpu.matmul %27, %28, %cst_19 {dimension_numbers = #tpu.dot_dimension_numbers<[1], [0], [0], [1], [0, 0, 1, 1], [], []>} : vector<16x256xf32>, vector<256x128xf32>, vector<16x128xf32> -> vector<16x128xf32>
    %30 = arith.addf %24, %29 : vector<16x128xf32>
    %31 = vector.extract_strided_slice %19 {offsets = [64, 0], sizes = [16, 256], strides = [1, 1]} : vector<128x256xf32> to vector<16x256xf32>
    %32 = vector.extract_strided_slice %19 {offsets = [80, 0], sizes = [16, 256], strides = [1, 1]} : vector<128x256xf32> to vector<16x256xf32>
    %33 = arith.addf %31, %32 : vector<16x256xf32>
    %c512_20 = arith.constant 512 : index
    %c0_21 = arith.constant 0 : index
    %34 = vector.load %arg4[%c512_20, %c0_21] : memref<1024x128xf32, #tpu.memory_space<vmem>>, vector<256x128xf32>
    %cst_22 = arith.constant dense<0.000000e+00> : vector<16x128xf32>
    %35 = tpu.matmul %33, %34, %cst_22 {dimension_numbers = #tpu.dot_dimension_numbers<[1], [0], [0], [1], [0, 0, 1, 1], [], []>} : vector<16x256xf32>, vector<256x128xf32>, vector<16x128xf32> -> vector<16x128xf32>
    %36 = arith.addf %30, %35 : vector<16x128xf32>
    %37 = vector.extract_strided_slice %19 {offsets = [96, 0], sizes = [16, 256], strides = [1, 1]} : vector<128x256xf32> to vector<16x256xf32>
    %38 = vector.extract_strided_slice %19 {offsets = [112, 0], sizes = [16, 256], strides = [1, 1]} : vector<128x256xf32> to vector<16x256xf32>
    %39 = arith.addf %37, %38 : vector<16x256xf32>
    %c768 = arith.constant 768 : index
    %c0_23 = arith.constant 0 : index
    %40 = vector.load %arg4[%c768, %c0_23] : memref<1024x128xf32, #tpu.memory_space<vmem>>, vector<256x128xf32>
    %cst_24 = arith.constant dense<0.000000e+00> : vector<16x128xf32>
    %41 = tpu.matmul %39, %40, %cst_24 {dimension_numbers = #tpu.dot_dimension_numbers<[1], [0], [0], [1], [0, 0, 1, 1], [], []>} : vector<16x256xf32>, vector<256x128xf32>, vector<16x128xf32> -> vector<16x128xf32>
    %42 = arith.addf %36, %41 : vector<16x128xf32>
    %c0_25 = arith.constant 0 : index
    %c0_26 = arith.constant 0 : index
    %43 = vector.load %arg5[%c0_25, %c0_26] : memref<1x128xf32, #tpu.memory_space<vmem>>, vector<1x128xf32>
    %44 = vector.broadcast %43 : vector<1x128xf32> to vector<16x128xf32>
    %45 = arith.addf %42, %44 : vector<16x128xf32>
    %c0_27 = arith.constant 0 : index
    %c0_28 = arith.constant 0 : index
    %46 = vector.load %arg6[%c0_27, %c0_28] : memref<16x128xf32, #tpu.memory_space<vmem>>, vector<16x128xf32>
    tpu.vector_store %arg6[%c0_27, %c0_28], %45 {strides = array<i32>} : memref<16x128xf32, #tpu.memory_space<vmem>>, vector<16x128xf32>,
    return
  }
  func.func @transform_0(%arg0: i32) -> (i32, i32) {
    %c0_i32 = arith.constant 0 : i32
    %c0_i32_0 = arith.constant 0 : i32
    return %arg0, %c0_i32 : i32, i32
  }
  func.func @transform_1(%arg0: i32) -> (i32, i32) {
    %c0_i32 = arith.constant 0 : i32
    %c0_i32_0 = arith.constant 0 : i32
    %c0_i32_1 = arith.constant 0 : i32
    return %c0_i32, %c0_i32_0 : i32, i32
  }
  func.func @transform_2(%arg0: i32) -> (i32, i32) {
    %c0_i32 = arith.constant 0 : i32
    %c0_i32_0 = arith.constant 0 : i32
    %c0_i32_1 = arith.constant 0 : i32
    return %c0_i32, %c0_i32_0 : i32, i32
  }
  func.func @transform_3(%arg0: i32) -> (i32, i32) {
    %c0_i32 = arith.constant 0 : i32
    %c0_i32_0 = arith.constant 0 : i32
    %c0_i32_1 = arith.constant 0 : i32
    return %c0_i32, %c0_i32_0 : i32, i32
  }
  func.func @transform_4(%arg0: i32) -> (i32, i32) {
    %c0_i32 = arith.constant 0 : i32
    %c0_i32_0 = arith.constant 0 : i32
    %c0_i32_1 = arith.constant 0 : i32
    return %c0_i32, %c0_i32_0 : i32, i32
  }
  func.func @transform_5(%arg0: i32) -> (i32, i32) {
    %c0_i32 = arith.constant 0 : i32
    %c0_i32_0 = arith.constant 0 : i32
    return %arg0, %c0_i32 : i32, i32
  }
}

</mosaic_0001>

<bundles_post_ra>
// kernel: tpu_custom_call.1
= control target key start
LH: loop header
LB: loop body
LE: loop exit
PB: predicated region body
PF: predicated region fallthrough
CT: control target
= control target key end

     0   :  { %10 = vsyncpa [#allocation3], 0  ;;  %s3468_s0 = inlined_call_operand.vmem [shape: f32[640,40], index: 0, kind: input, shape index: {}]   ;;  %s3469_s1 = inlined_call_operand.vmem [shape: f32[40,256], index: 1, kind: input, shape index: {}]   ;;  %s3470_s2 = inlined_call_operand.vmem [shape: f32[1,256], index: 2, kind: input, shape index: {}]   ;;  %s3471_s3 = inlined_call_operand.hbm [shape: f32[1024,128], index: 3, kind: input, shape index: {}]   ;;  %s3472_s4 = inlined_call_operand.vmem [shape: f32[1,128], index: 4, kind: input, shape index: {}]   ;;  %s3473_s5 = inlined_call_operand.hbm [shape: f32[16,128], index: 5, kind: output, shape index: {}]  }
   0x1   :  { %11 = vsyncpa [#allocation4], 0  ;;  %s2305_s18 = smov [#allocation2]   ;;  %s2257_s22 = scalar_lea.hbm %s3471_s3, 16384 }
   0x2   :  { %s23_s19 = sshll.u32 %s2305_s18, 4  ;;  %p2258_p0 = scmp.ne.s32.totalorder %s3471_s3, %s2257_s22  ;;  %s24_s19 = int_to_ptr.vmem [resolvable:$true] %s23_s19 }
   0x3   :  { %p2261_p1 = scmp.lt.u32.totalorder %s2257_s22, %s3471_s3 }
   0x5   :  { %p2263_p2 = pnand %p2261_p1, %p2258_p0 }
   0x7   :  { %2266 = shalt.err (!%p2263_p2)
}
   0x8   :  { %s2267_s27 = scalar_lea.vmem %s24_s19, 16384  ;;  %p2272_p4 = scmp.lt.s32.totalorder %s24_s19, %s24_s19 }
   0x9   :  { %p2268_p3 = scmp.ne.s32.totalorder %s24_s19, %s2267_s27  ;;  %p2273_p5 = scmp.lt.s32.totalorder %s2267_s27, %s2267_s27 }
   0xb   :  { %p2274_p6 = por %p2273_p5, %p2272_p4 }
   0xd   :  { %p2275_p7 = pnand %p2274_p6, %p2268_p3 }
   0xf   :  { %2278 = shalt.err (!%p2275_p7)
}
  0x10   :  { %s2306_s28 = smov 128   ;;  %s2307_s29 = smov 8  }
  0x11   :  { %29 = dma.hbm_to_vmem [thread:$0]  %s3471_s3, 16384, %s24_s19, [#allocation3], %s2306_s28, %s2306_s28, %s2307_s29  }
  0x12   :  { %2301 = dma.done.wait [#allocation3], 16384  }
  0x13   :  { %2302 = vsyncadd [#allocation3], 4294950912  ;;  %v2308_v0 = vmov 0.0   ;;  %v36_v1 = vld [vmem:[%s3469_s1 + $0x8] sm:$0xff]  ;;  %v38_v2 = vld [vmem:[%s3469_s1 + $0x18] sm:$0xff]  ;;  %vm61_vm0 = vcmask 326656  }
  0x14   :  { %174 = vmatprep.mubr.f32.mxu0 %v2308_v0  ;;  %399 = vmatprep.mubr.f32.mxu1 %v2308_v0  ;;  %v35_v3 = vld [vmem:[%s3469_s1] sm:$0xff]  ;;  %v2084_v4 = vpack.c.bf16 %v38_v2, %v36_v1  ;;  %v37_v5 = vld [vmem:[%s3469_s1 + $0x10] sm:$0xff]  ;;  %v40_v6 = vld [vmem:[%s3469_s1 + $0x28] sm:$0xff]  ;;  %s2309_s13 = smov [#allocation5]  }
  0x15   :  { %v42_v7 = vld [vmem:[%s3469_s1 + $0x38] sm:$0xff]  ;;  %v2375_v8 = vpack.c.bf16 %v37_v5, %v35_v3  ;;  %v39_v10 = vld [vmem:[%s3469_s1 + $0x20] sm:$0xff]  ;;  %v41_v11 = vld [vmem:[%s3469_s1 + $0x30] sm:$0xff]  ;;  %s1839_s14 = sshll.u32 %s2309_s13, 4  ;;  %s1840_s14 = int_to_ptr.vmem [resolvable:$true] %s1839_s14 }
  0x16   :  { %v2377_v9 = vpack.c.bf16 %v42_v7, %v40_v6  ;;  %2085 = vmatprep.subr.bf16.mxu0 %v2084_v4  ;;  %2093 = vmatprep.subr.bf16.mxu1 %v2084_v4  ;;  %v2387_v12 = vpack.c.bf16 %v41_v11, %v39_v10  ;;  %v2394_v13 = vld [vmem:[%s3469_s1 + $0x48] sm:$0xff]  ;;  %v2403_v14 = vld [vmem:[%s3469_s1 + $0x40] sm:$0xff]  ;;  %v47_v19 = vld [vmem:[%s3468_s0 + $0x10] sm:$0xff]  ;;  %s2279_s15 = scalar_lea.vmem %s1840_s14, 256  ;;  %p2284_p9 = scmp.lt.s32.totalorder %s1840_s14, %s1840_s14 }
  0x17   :  { %2087 = vmatpush1.bf16.msra.mxu0 %v2375_v8  ;;  %2095 = vmatpush1.bf16.msra.mxu1 %v2375_v8  ;;  %v45_v15 = vld [vmem:[%s3468_s0] sm:$0xff]  ;;  %v46_v17 = vld [vmem:[%s3468_s0 + $0x8] sm:$0xff]  ;;  %v273_v20 = vld [vmem:[%s3468_s0 + $0x90] sm:$0xff]  ;;  %p2280_p8 = scmp.ne.s32.totalorder %s1840_s14, %s2279_s15  ;;  %p2285_p10 = scmp.lt.s32.totalorder %s2279_s15, %s2279_s15 }
  0x18   :  { %2089 = vmatprep.subr.bf16.mxu0 %v2377_v9  ;;  %2097 = vmatprep.subr.bf16.mxu1 %v2377_v9  ;;  %v271_v16 = vld [vmem:[%s3468_s0 + $0x80] sm:$0xff]  ;;  %v272_v18 = vld [vmem:[%s3468_s0 + $0x88] sm:$0xff]  ;;  %v48_v21 = vld [vmem:[%s3468_s0 + $0x18] sm:$0xff] }
  0x19   :  { %v274_v22 = vld [vmem:[%s3468_s0 + $0x98] sm:$0xff]  ;;  %v49_v23 = vld [vmem:[%s3468_s0 + $0x20] sm:$0xff]  ;;  %v50_v25 = vld [vmem:[%s3468_s0 + $0x28] sm:$0xff]  ;;  %p2286_p11 = por %p2285_p10, %p2284_p9 }
  0x1a   :  { %v275_v24 = vld [vmem:[%s3468_s0 + $0xa0] sm:$0xff]  ;;  %v276_v26 = vld [vmem:[%s3468_s0 + $0xa8] sm:$0xff]  ;;  %v51_v27 = vld [vmem:[%s3468_s0 + $0x30] sm:$0xff] }
  0x1b   :  { %2091 = vmatpush1.bf16.msra.mxu0 %v2387_v12  ;;  %2099 = vmatpush1.bf16.msra.mxu1 %v2387_v12  ;;  %v277_v28 = vld [vmem:[%s3468_s0 + $0xb0] sm:$0xff]  ;;  %v52_v29 = vld [vmem:[%s3468_s0 + $0x38] sm:$0xff]  ;;  %v53_v31 = vld [vmem:[%s3468_s0 + $0x40] sm:$0xff]  ;;  %p2287_p12 = pnand %p2286_p11, %p2280_p8 }
  0x1c   :  { %118 = vmatprep.subr.mxu0 %v2394_v13  ;;  %343 = vmatprep.subr.mxu1 %v2394_v13  ;;  %v278_v30 = vld [vmem:[%s3468_s0 + $0xb8] sm:$0xff]  ;;  %v279_v32 = vld [vmem:[%s3468_s0 + $0xc0] sm:$0xff]  ;;  %v54_v33 = vld [vmem:[%s3468_s0 + $0x48] sm:$0xff] }
  0x1d   :  { %v280_v34 = vld [vmem:[%s3468_s0 + $0xc8] sm:$0xff]  ;;  %v55_v35 = vld [vmem:[%s3468_s0 + $0x50] sm:$0xff]  ;;  %v56_v37 = vld [vmem:[%s3468_s0 + $0x58] sm:$0xff] }
  0x1e   :  { %v281_v36 = vld [vmem:[%s3468_s0 + $0xd0] sm:$0xff]  ;;  %v282_v38 = vld [vmem:[%s3468_s0 + $0xd8] sm:$0xff]  ;;  %v57_v39 = vld [vmem:[%s3468_s0 + $0x60] sm:$0xff] }
  0x1f   :  { %119 = vmatpush1.msra.mxu0 %v2403_v14  ;;  %344 = vmatpush1.msra.mxu1 %v2403_v14  ;;  %v283_v40 = vld [vmem:[%s3468_s0 + $0xe0] sm:$0xff]  ;;  %v58_v41 = vld [vmem:[%s3468_s0 + $0x68] sm:$0xff]  ;;  %v59_v43 = vld [vmem:[%s3468_s0 + $0x70] sm:$0xff] }
  0x20   :  { %1851 = vmatmul.mubr.msk.f32.vlgmr.msra.gmra.mrb[0].mxu0 %vm61_vm0, %v45_v15  ;;  %1867 = vmatmul.mubr.msk.f32.vlgmr.msra.gmra.mrb[0].mxu1 %vm61_vm0, %v271_v16  ;;  %v284_v42 = vld [vmem:[%s3468_s0 + $0xe8] sm:$0xff]  ;;  %v285_v44 = vld [vmem:[%s3468_s0 + $0xf0] sm:$0xff]  ;;  %v60_v45 = vld [vmem:[%s3468_s0 + $0x78] sm:$0xff] }
  0x21   :  { %2101 = vmatprep.subr.bf16.mxu0 %v2084_v4  ;;  %180 = vmatprep.mubr.f32.mxu0 %v2308_v0  ;;  %v286_v46 = vld [vmem:[%s3468_s0 + $0xf8] sm:$0xff]  ;;  %v528_v47 = vld [vmem:[%s3468_s0 + $0x100] sm:$0xff]  ;;  %v529_v49 = vld [vmem:[%s3468_s0 + $0x108] sm:$0xff] }
  0x22   :  { %2103 = vmatpush1.bf16.msra.mxu0 %v2375_v8  ;;  %405 = vmatprep.mubr.f32.mxu1 %v2308_v0  ;;  %v785_v48 = vld [vmem:[%s3468_s0 + $0x180] sm:$0xff]  ;;  %v786_v50 = vld [vmem:[%s3468_s0 + $0x188] sm:$0xff]  ;;  %v530_v51 = vld [vmem:[%s3468_s0 + $0x110] sm:$0xff] }
  0x23   :  { %2105 = vmatprep.subr.bf16.mxu0 %v2377_v9  ;;  %2109 = vmatprep.subr.bf16.mxu1 %v2084_v4  ;;  %v787_v52 = vld [vmem:[%s3468_s0 + $0x190] sm:$0xff]  ;;  %v531_v53 = vld [vmem:[%s3468_s0 + $0x118] sm:$0xff]  ;;  %v532_v55 = vld [vmem:[%s3468_s0 + $0x120] sm:$0xff] }
  0x24   :  { %1852 = vmatmul.mubr.msk.f32.gmra.mrb[2].mxu0 %vm61_vm0, %v46_v17  ;;  %1868 = vmatmul.mubr.msk.f32.gmra.mrb[2].mxu1 %vm61_vm0, %v272_v18  ;;  %v788_v54 = vld [vmem:[%s3468_s0 + $0x198] sm:$0xff]  ;;  %v789_v56 = vld [vmem:[%s3468_s0 + $0x1a0] sm:$0xff]  ;;  %v533_v57 = vld [vmem:[%s3468_s0 + $0x128] sm:$0xff] }
  0x25   :  { %186 = vmatprep.mubr.f32.mxu0 %v2308_v0  ;;  %411 = vmatprep.mubr.f32.mxu1 %v2308_v0  ;;  %v790_v58 = vld [vmem:[%s3468_s0 + $0x1a8] sm:$0xff]  ;;  %v534_v59 = vld [vmem:[%s3468_s0 + $0x130] sm:$0xff]  ;;  %v535_v61 = vld [vmem:[%s3468_s0 + $0x138] sm:$0xff] }
  0x26   :  { %2107 = vmatpush1.bf16.msra.mxu0 %v2387_v12  ;;  %2111 = vmatpush1.bf16.msra.mxu1 %v2375_v8  ;;  %v791_v60 = vld [vmem:[%s3468_s0 + $0x1b0] sm:$0xff]  ;;  %v792_v62 = vld [vmem:[%s3468_s0 + $0x1b8] sm:$0xff]  ;;  %v536_v63 = vld [vmem:[%s3468_s0 + $0x140] sm:$0xff] }
  0x27   :  { %600 = vmatprep.subr.mxu0 %v2394_v13  ;;  %2113 = vmatprep.subr.bf16.mxu1 %v2377_v9  ;;  %v793_v1 = vld [vmem:[%s3468_s0 + $0x1c0] sm:$0xff]  ;;  %v537_v2 = vld [vmem:[%s3468_s0 + $0x148] sm:$0xff]  ;;  %v795_v5 = vld [vmem:[%s3468_s0 + $0x1d0] sm:$0xff] }
  0x28   :  { %1853 = vmatmul.mubr.msk.f32.gmra.mrb[4].mxu0 %vm61_vm0, %v47_v19  ;;  %1869 = vmatmul.mubr.msk.f32.gmra.mrb[4].mxu1 %vm61_vm0, %v273_v20  ;;  %v794_v3 = vld [vmem:[%s3468_s0 + $0x1c8] sm:$0xff]  ;;  %v539_v6 = vld [vmem:[%s3468_s0 + $0x158] sm:$0xff]  ;;  %v1042_v16 = vld [vmem:[%s3468_s0 + $0x200] sm:$0xff] }
  0x29   :  { %192 = vmatprep.mubr.f32.mxu0 %v2308_v0  ;;  %417 = vmatprep.mubr.f32.mxu1 %v2308_v0  ;;  %v796_v7 = vld [vmem:[%s3468_s0 + $0x1d8] sm:$0xff]  ;;  %v541_v10 = vld [vmem:[%s3468_s0 + $0x168] sm:$0xff]  ;;  %v1044_v18 = vld [vmem:[%s3468_s0 + $0x210] sm:$0xff] }
  0x2a   :  { %601 = vmatpush1.msra.mxu0 %v2403_v14  ;;  %2115 = vmatpush1.bf16.msra.mxu1 %v2387_v12  ;;  %v798_v11 = vld [vmem:[%s3468_s0 + $0x1e8] sm:$0xff]  ;;  %v800_v15 = vld [vmem:[%s3468_s0 + $0x1f8] sm:$0xff]  ;;  %v1046_v20 = vld [vmem:[%s3468_s0 + $0x220] sm:$0xff] }
  0x2b   :  { %857 = vmatprep.subr.mxu1 %v2394_v13  ;;  %2117 = vmatprep.subr.bf16.mxu0 %v2084_v4  ;;  %v538_v4 = vld [vmem:[%s3468_s0 + $0x150] sm:$0xff]  ;;  %v1043_v17 = vld [vmem:[%s3468_s0 + $0x208] sm:$0xff]  ;;  %v1045_v19 = vld [vmem:[%s3468_s0 + $0x218] sm:$0xff] }
  0x2c   :  { %1854 = vmatmul.mubr.msk.f32.gmra.mrb[6].mxu0 %vm61_vm0, %v48_v21  ;;  %1870 = vmatmul.mubr.msk.f32.gmra.mrb[6].mxu1 %vm61_vm0, %v274_v22  ;;  %v1047_v21 = vld [vmem:[%s3468_s0 + $0x228] sm:$0xff]  ;;  %v1048_v22 = vld [vmem:[%s3468_s0 + $0x230] sm:$0xff] }
  0x2d   :  { %198 = vmatprep.mubr.f32.mxu0 %v2308_v0  ;;  %423 = vmatprep.mubr.f32.mxu1 %v2308_v0 }
  0x2e   :  { %858 = vmatpush1.msra.mxu1 %v2403_v14 }
  0x30   :  { %1855 = vmatmul.mubr.msk.f32.gmra.mrb[8].mxu0 %vm61_vm0, %v49_v23  ;;  %1871 = vmatmul.mubr.msk.f32.gmra.mrb[8].mxu1 %vm61_vm0, %v275_v24  ;;  %v1049_v23 = vld [vmem:[%s3468_s0 + $0x238] sm:$0xff]  ;;  %v1050_v24 = vld [vmem:[%s3468_s0 + $0x240] sm:$0xff] }
  0x31   :  { %204 = vmatprep.mubr.f32.mxu0 %v2308_v0  ;;  %429 = vmatprep.mubr.f32.mxu1 %v2308_v0 }
  0x34   :  { %1856 = vmatmul.mubr.msk.f32.gmra.mrb[10].mxu0 %vm61_vm0, %v50_v25  ;;  %1872 = vmatmul.mubr.msk.f32.gmra.mrb[10].mxu1 %vm61_vm0, %v276_v26  ;;  %v1051_v25 = vld [vmem:[%s3468_s0 + $0x248] sm:$0xff]  ;;  %v1052_v26 = vld [vmem:[%s3468_s0 + $0x250] sm:$0xff] }
  0x35   :  { %210 = vmatprep.mubr.f32.mxu0 %v2308_v0  ;;  %435 = vmatprep.mubr.f32.mxu1 %v2308_v0 }
  0x38   :  { %1857 = vmatmul.mubr.msk.f32.gmra.mrb[12].mxu0 %vm61_vm0, %v51_v27  ;;  %1873 = vmatmul.mubr.msk.f32.gmra.mrb[12].mxu1 %vm61_vm0, %v277_v28  ;;  %v1053_v27 = vld [vmem:[%s3468_s0 + $0x258] sm:$0xff]  ;;  %v1054_v28 = vld [vmem:[%s3468_s0 + $0x260] sm:$0xff] }
  0x39   :  { %216 = vmatprep.mubr.f32.mxu0 %v2308_v0  ;;  %441 = vmatprep.mubr.f32.mxu1 %v2308_v0 }
  0x3c   :  { %1858 = vmatmul.mubr.msk.f32.gmra.mrb[14].mxu0 %vm61_vm0, %v52_v29  ;;  %1874 = vmatmul.mubr.msk.f32.gmra.mrb[14].mxu1 %vm61_vm0, %v278_v30  ;;  %v1055_v29 = vld [vmem:[%s3468_s0 + $0x268] sm:$0xff]  ;;  %v1056_v30 = vld [vmem:[%s3468_s0 + $0x270] sm:$0xff] }
  0x3d   :  { %222 = vmatprep.mubr.f32.mxu0 %v2308_v0  ;;  %447 = vmatprep.mubr.f32.mxu1 %v2308_v0 }
  0x40   :  { %1859 = vmatmul.mubr.msk.f32.gmra.mrb[16].mxu0 %vm61_vm0, %v53_v31  ;;  %1875 = vmatmul.mubr.msk.f32.gmra.mrb[16].mxu1 %vm61_vm0, %v279_v32  ;;  %v1431_v31 = vld [vmem:[#allocation2 + $0x180] sm:$0xff]  ;;  %v1432_v32 = vld [vmem:[#allocation2 + $0x188] sm:$0xff] }
  0x41   :  { %228 = vmatprep.mubr.f32.mxu0 %v2308_v0  ;;  %453 = vmatprep.mubr.f32.mxu1 %v2308_v0 }
  0x44   :  { %1860 = vmatmul.mubr.msk.f32.gmra.mrb[18].mxu0 %vm61_vm0, %v54_v33  ;;  %1876 = vmatmul.mubr.msk.f32.gmra.mrb[18].mxu1 %vm61_vm0, %v280_v34  ;;  %v2124_v33 = vpack.c.bf16 %v1432_v32, %v1431_v31  ;;  %v1415_v34 = vld [vmem:[#allocation2 + $0x100] sm:$0xff]  ;;  %v1425_v32 = vld [vmem:[#allocation2 + $0x150] sm:$0xff] }
  0x45   :  { %234 = vmatprep.mubr.f32.mxu0 %v2308_v0  ;;  %459 = vmatprep.mubr.f32.mxu1 %v2308_v0 }
  0x46   :  { %2125 = vmatprep.subr.bf16.mxu1 %v2124_v33  ;;  %v1426_v33 = vld [vmem:[#allocation2 + $0x158] sm:$0xff] }
  0x48   :  { %1861 = vmatmul.mubr.msk.f32.gmra.mrb[20].mxu0 %vm61_vm0, %v55_v35  ;;  %1877 = vmatmul.mubr.msk.f32.gmra.mrb[20].mxu1 %vm61_vm0, %v281_v36  ;;  %v1416_v35 = vld [vmem:[#allocation2 + $0x108] sm:$0xff]  ;;  %v1057_v36 = vld [vmem:[%s3468_s0 + $0x278] sm:$0xff] }
  0x49   :  { %240 = vmatprep.mubr.f32.mxu0 %v2308_v0  ;;  %465 = vmatprep.mubr.f32.mxu1 %v2308_v0 }
  0x4c   :  { %1862 = vmatmul.mubr.msk.f32.gmra.mrb[22].mxu0 %vm61_vm0, %v56_v37  ;;  %1878 = vmatmul.mubr.msk.f32.gmra.mrb[22].mxu1 %vm61_vm0, %v282_v38  ;;  %v2126_v37 = vpack.c.bf16 %v1416_v35, %v1415_v34  ;;  %v1433_v38 = vld [vmem:[#allocation2 + $0x190] sm:$0xff]  ;;  %v1601_v35 = vld [vmem:[#allocation2 + $0x200] sm:$0xff] }
  0x4d   :  { %246 = vmatprep.mubr.f32.mxu0 %v2308_v0  ;;  %471 = vmatprep.mubr.f32.mxu1 %v2308_v0 }
  0x50   :  { %1863 = vmatmul.mubr.msk.f32.gmra.mrb[24].mxu0 %vm61_vm0, %v57_v39  ;;  %1879 = vmatmul.mubr.msk.f32.gmra.mrb[24].mxu1 %vm61_vm0, %v283_v40  ;;  %v1434_v39 = vld [vmem:[#allocation2 + $0x198] sm:$0xff] }
  0x51   :  { %252 = vmatprep.mubr.f32.mxu0 %v2308_v0  ;;  %477 = vmatprep.mubr.f32.mxu1 %v2308_v0  ;;  %v2128_v40 = vpack.c.bf16 %v1434_v39, %v1433_v38  ;;  %v1602_v38 = vld [vmem:[#allocation2 + $0x208] sm:$0xff] }
  0x52   :  { %v2190_v39 = vpack.c.bf16 %v1602_v38, %v1601_v35  ;;  %v1445_v35 = vld [vmem:[#allocation2 + $0x1f0] sm:$0xff] }
  0x54   :  { %1864 = vmatmul.mubr.msk.f32.gmra.mrb[26].mxu0 %vm61_vm0, %v58_v41  ;;  %1880 = vmatmul.mubr.msk.f32.gmra.mrb[26].mxu1 %vm61_vm0, %v284_v42  ;;  %v1417_v41 = vld [vmem:[#allocation2 + $0x110] sm:$0xff]  ;;  %v1418_v42 = vld [vmem:[#allocation2 + $0x118] sm:$0xff] }
  0x55   :  { %258 = vmatprep.mubr.f32.mxu0 %v2308_v0  ;;  %483 = vmatprep.mubr.f32.mxu1 %v2308_v0 }
  0x58   :  { %1865 = vmatmul.mubr.msk.f32.gmra.mrb[28].mxu0 %vm61_vm0, %v59_v43  ;;  %1881 = vmatmul.mubr.msk.f32.gmra.mrb[28].mxu1 %vm61_vm0, %v285_v44  ;;  %v2130_v43 = vpack.c.bf16 %v1418_v42, %v1417_v41  ;;  %v1435_v44 = vld [vmem:[#allocation2 + $0x1a0] sm:$0xff]  ;;  %v1619_v42 = vld [vmem:[#allocation2 + $0x290] sm:$0xff] }
  0x59   :  { %264 = vmatprep.mubr.f32.mxu0 %v2308_v0  ;;  %489 = vmatprep.mubr.f32.mxu1 %v2308_v0 }
  0x5c   :  { %1866 = vmatmul.mubr.msk.f32.gmra.mrb[30].mxu0 %vm61_vm0, %v60_v45  ;;  %1882 = vmatmul.mubr.msk.f32.gmra.mrb[30].mxu1 %vm61_vm0, %v286_v46  ;;  %v1436_v45 = vld [vmem:[#allocation2 + $0x1a8] sm:$0xff]  ;;  %v1419_v46 = vld [vmem:[#allocation2 + $0x120] sm:$0xff] }
  0x5d   :  { %656 = vmatprep.mubr.f32.mxu0 %v2308_v0  ;;  %913 = vmatprep.mubr.f32.mxu1 %v2308_v0 }
  0x60   :  { %1883 = vmatmul.mubr.msk.f32.vlgmr.msra.gmra.mrb[32].mxu0 %vm61_vm0, %v528_v47  ;;  %1899 = vmatmul.mubr.msk.f32.vlgmr.msra.gmra.mrb[32].mxu1 %vm61_vm0, %v785_v48  ;;  %v1420_v47 = vld [vmem:[#allocation2 + $0x128] sm:$0xff] }
  0x61   :  { %2119 = vmatpush1.bf16.msra.mxu0 %v2375_v8  ;;  %662 = vmatprep.mubr.f32.mxu0 %v2308_v0  ;;  %v540_v8 = vld [vmem:[%s3468_s0 + $0x160] sm:$0xff]  ;;  %v2134_v48 = vpack.c.bf16 %v1420_v47, %v1419_v46  ;;  %v1603_v47 = vld [vmem:[#allocation2 + $0x210] sm:$0xff] }
  0x62   :  { %919 = vmatprep.mubr.f32.mxu1 %v2308_v0  ;;  %2121 = vmatprep.subr.bf16.mxu0 %v2377_v9  ;;  %v797_v9 = vld [vmem:[%s3468_s0 + $0x1e0] sm:$0xff] }
  0x63   :  { %2127 = vmatpush3.bf16.msra.mxu1 %v2126_v37  ;;  %v2146_v37 = vpack.c.bf16 %v1426_v33, %v1425_v32 }
  0x64   :  { %1884 = vmatmul.mubr.msk.f32.gmra.mrb[34].mxu0 %vm61_vm0, %v529_v49  ;;  %1900 = vmatmul.mubr.msk.f32.gmra.mrb[34].mxu1 %vm61_vm0, %v786_v50  ;;  %v1437_v49 = vld [vmem:[#allocation2 + $0x1b0] sm:$0xff]  ;;  %v1438_v50 = vld [vmem:[#allocation2 + $0x1b8] sm:$0xff] }
  0x65   :  { %668 = vmatprep.mubr.f32.mxu0 %v2308_v0  ;;  %925 = vmatprep.mubr.f32.mxu1 %v2308_v0 }
  0x66   :  { %2123 = vmatpush1.bf16.msra.mxu0 %v2387_v12  ;;  %v542_v12 = vld [vmem:[%s3468_s0 + $0x170] sm:$0xff]  ;;  %2129 = vmatprep.subr.bf16.mxu1 %v2128_v40 }
  0x67   :  { %1114 = vmatprep.subr.mxu0 %v2394_v13  ;;  %v799_v13 = vld [vmem:[%s3468_s0 + $0x1f0] sm:$0xff]  ;;  %2131 = vmatpush3.bf16.msra.mxu1 %v2130_v43  ;;  %v1620_v43 = vld [vmem:[#allocation2 + $0x298] sm:$0xff] }
  0x68   :  { %1885 = vmatmul.mubr.msk.f32.gmra.mrb[36].mxu0 %vm61_vm0, %v530_v51  ;;  %1901 = vmatmul.mubr.msk.f32.gmra.mrb[36].mxu1 %vm61_vm0, %v787_v52  ;;  %v2136_v51 = vpack.c.bf16 %v1438_v50, %v1437_v49  ;;  %v1421_v52 = vld [vmem:[#allocation2 + $0x130] sm:$0xff]  ;;  %v2192_v46 = vpack.c.bf16 %v1620_v43, %v1619_v42  ;;  %v1443_v50 = vld [vmem:[#allocation2 + $0x1e0] sm:$0xff] }
  0x69   :  { %674 = vmatprep.mubr.f32.mxu0 %v2308_v0  ;;  %931 = vmatprep.mubr.f32.mxu1 %v2308_v0  ;;  %v1429_v43 = vld [vmem:[#allocation2 + $0x170] sm:$0xff] }
  0x6a   :  { %1115 = vmatpush1.msra.mxu0 %v2403_v14  ;;  %v543_v14 = vld [vmem:[%s3468_s0 + $0x178] sm:$0xff] }
  0x6c   :  { %1886 = vmatmul.mubr.msk.f32.gmra.mrb[38].mxu0 %vm61_vm0, %v531_v53  ;;  %1902 = vmatmul.mubr.msk.f32.gmra.mrb[38].mxu1 %vm61_vm0, %v788_v54  ;;  %v1422_v53 = vld [vmem:[#allocation2 + $0x138] sm:$0xff] }
  0x6d   :  { %680 = vmatprep.mubr.f32.mxu0 %v2308_v0  ;;  %937 = vmatprep.mubr.f32.mxu1 %v2308_v0  ;;  %v2138_v54 = vpack.c.bf16 %v1422_v53, %v1421_v52 }
  0x70   :  { %1887 = vmatmul.mubr.msk.f32.gmra.mrb[40].mxu0 %vm61_vm0, %v532_v55  ;;  %1903 = vmatmul.mubr.msk.f32.gmra.mrb[40].mxu1 %vm61_vm0, %v789_v56 }
  0x71   :  { %686 = vmatprep.mubr.f32.mxu0 %v2308_v0  ;;  %943 = vmatprep.mubr.f32.mxu1 %v2308_v0 }
  0x74   :  { %1888 = vmatmul.mubr.msk.f32.gmra.mrb[42].mxu0 %vm61_vm0, %v533_v57  ;;  %1904 = vmatmul.mubr.msk.f32.gmra.mrb[42].mxu1 %vm61_vm0, %v790_v58 }
  0x75   :  { %692 = vmatprep.mubr.f32.mxu0 %v2308_v0  ;;  %949 = vmatprep.mubr.f32.mxu1 %v2308_v0 }
  0x78   :  { %1889 = vmatmul.mubr.msk.f32.gmra.mrb[44].mxu0 %vm61_vm0, %v534_v59  ;;  %1905 = vmatmul.mubr.msk.f32.gmra.mrb[44].mxu1 %vm61_vm0, %v791_v60 }
  0x79   :  { %698 = vmatprep.mubr.f32.mxu0 %v2308_v0  ;;  %955 = vmatprep.mubr.f32.mxu1 %v2308_v0 }
  0x7c   :  { %1890 = vmatmul.mubr.msk.f32.gmra.mrb[46].mxu0 %vm61_vm0, %v535_v61  ;;  %1906 = vmatmul.mubr.msk.f32.gmra.mrb[46].mxu1 %vm61_vm0, %v792_v62 }
  0x7d   :  { %704 = vmatprep.mubr.f32.mxu0 %v2308_v0  ;;  %961 = vmatprep.mubr.f32.mxu1 %v2308_v0 }
  0x80   :  { %1891 = vmatmul.mubr.msk.f32.gmra.mrb[48].mxu0 %vm61_vm0, %v536_v63  ;;  %1907 = vmatmul.mubr.msk.f32.gmra.mrb[48].mxu1 %vm61_vm0, %v793_v1 }
  0x81   :  { %710 = vmatprep.mubr.f32.mxu0 %v2308_v0  ;;  %967 = vmatprep.mubr.f32.mxu1 %v2308_v0 }
  0x84   :  { %1892 = vmatmul.mubr.msk.f32.gmra.mrb[50].mxu0 %vm61_vm0, %v537_v2  ;;  %1908 = vmatmul.mubr.msk.f32.gmra.mrb[50].mxu1 %vm61_vm0, %v794_v3 }
  0x85   :  { %716 = vmatprep.mubr.f32.mxu0 %v2308_v0  ;;  %973 = vmatprep.mubr.f32.mxu1 %v2308_v0 }
  0x88   :  { %1893 = vmatmul.mubr.msk.f32.gmra.mrb[52].mxu0 %vm61_vm0, %v538_v4  ;;  %1909 = vmatmul.mubr.msk.f32.gmra.mrb[52].mxu1 %vm61_vm0, %v795_v5  ;;  %v1439_v4 = vld [vmem:[#allocation2 + $0x1c0] sm:$0xff]  ;;  %v1440_v5 = vld [vmem:[#allocation2 + $0x1c8] sm:$0xff] }
  0x89   :  { %722 = vmatprep.mubr.f32.mxu0 %v2308_v0  ;;  %979 = vmatprep.mubr.f32.mxu1 %v2308_v0 }
  0x8c   :  { %1894 = vmatmul.mubr.msk.f32.gmra.mrb[54].mxu0 %vm61_vm0, %v539_v6  ;;  %1910 = vmatmul.mubr.msk.f32.gmra.mrb[54].mxu1 %vm61_vm0, %v796_v7  ;;  %v2140_v6 = vpack.c.bf16 %v1440_v5, %v1439_v4  ;;  %v1427_v5 = vld [vmem:[#allocation2 + $0x160] sm:$0xff] }
  0x8d   :  { %728 = vmatprep.mubr.f32.mxu0 %v2308_v0  ;;  %985 = vmatprep.mubr.f32.mxu1 %v2308_v0 }
  0x90   :  { %1895 = vmatmul.mubr.msk.f32.gmra.mrb[56].mxu0 %vm61_vm0, %v540_v8  ;;  %1911 = vmatmul.mubr.msk.f32.gmra.mrb[56].mxu1 %vm61_vm0, %v797_v9 }
  0x91   :  { %734 = vmatprep.mubr.f32.mxu0 %v2308_v0  ;;  %991 = vmatprep.mubr.f32.mxu1 %v2308_v0 }
  0x94   :  { %1896 = vmatmul.mubr.msk.f32.gmra.mrb[58].mxu0 %vm61_vm0, %v541_v10  ;;  %1912 = vmatmul.mubr.msk.f32.gmra.mrb[58].mxu1 %vm61_vm0, %v798_v11 }
  0x95   :  { %740 = vmatprep.mubr.f32.mxu0 %v2308_v0  ;;  %997 = vmatprep.mubr.f32.mxu1 %v2308_v0 }
  0x98   :  { %1897 = vmatmul.mubr.msk.f32.gmra.mrb[60].mxu0 %vm61_vm0, %v542_v12  ;;  %1913 = vmatmul.mubr.msk.f32.gmra.mrb[60].mxu1 %vm61_vm0, %v799_v13  ;;  %v1423_v12 = vld [vmem:[#allocation2 + $0x140] sm:$0xff]  ;;  %v1424_v13 = vld [vmem:[#allocation2 + $0x148] sm:$0xff] }
  0x99   :  { %746 = vmatprep.mubr.f32.mxu0 %v2308_v0  ;;  %1003 = vmatprep.mubr.f32.mxu1 %v2308_v0 }
  0x9c   :  { %1898 = vmatmul.mubr.msk.f32.gmra.mrb[62].mxu0 %vm61_vm0, %v543_v14  ;;  %1914 = vmatmul.mubr.msk.f32.gmra.mrb[62].mxu1 %vm61_vm0, %v800_v15  ;;  %v2142_v15 = vpack.c.bf16 %v1424_v13, %v1423_v12  ;;  %v1621_v12 = vld [vmem:[#allocation2 + $0x2a0] sm:$0xff] }
  0x9d   :  { %1170 = vmatprep.mubr.f32.mxu0 %v2308_v0 }
  0xa0   :  { %1915 = vmatmul.mubr.msk.f32.vlgmr.msra.gmra.mrb[64].mxu0 %vm61_vm0, %v1042_v16 }
  0xa1   :  { %1176 = vmatprep.mubr.f32.mxu0 %v2308_v0 }
  0xa4   :  { %1916 = vmatmul.mubr.msk.f32.gmra.mrb[66].mxu0 %vm61_vm0, %v1043_v17 }
  0xa5   :  { %1182 = vmatprep.mubr.f32.mxu0 %v2308_v0 }
  0xa8   :  { %1917 = vmatmul.mubr.msk.f32.gmra.mrb[68].mxu0 %vm61_vm0, %v1044_v18  ;;  %v1631_v18 = vld [vmem:[#allocation2 + $0x2f0] sm:$0xff] }
  0xa9   :  { %1188 = vmatprep.mubr.f32.mxu0 %v2308_v0 }
  0xac   :  { %1918 = vmatmul.mubr.msk.f32.gmra.mrb[70].mxu0 %vm61_vm0, %v1045_v19 }
  0xad   :  { %1194 = vmatprep.mubr.f32.mxu0 %v2308_v0 }
  0xb0   :  { %1919 = vmatmul.mubr.msk.f32.gmra.mrb[72].mxu0 %vm61_vm0, %v1046_v20 }
  0xb1   :  { %1200 = vmatprep.mubr.f32.mxu0 %v2308_v0 }
  0xb4   :  { %1920 = vmatmul.mubr.msk.f32.gmra.mrb[74].mxu0 %vm61_vm0, %v1047_v21 }
  0xb5   :  { %1206 = vmatprep.mubr.f32.mxu0 %v2308_v0 }
  0xb8   :  { %1921 = vmatmul.mubr.msk.f32.gmra.mrb[76].mxu0 %vm61_vm0, %v1048_v22  ;;  %v1441_v22 = vld [vmem:[#allocation2 + $0x1d0] sm:$0xff] }
  0xb9   :  { %1212 = vmatprep.mubr.f32.mxu0 %v2308_v0 }
  0xbc   :  { %1922 = vmatmul.mubr.msk.f32.gmra.mrb[78].mxu0 %vm61_vm0, %v1049_v23  ;;  %v1442_v23 = vld [vmem:[#allocation2 + $0x1d8] sm:$0xff] }
  0xbd   :  { %1218 = vmatprep.mubr.f32.mxu0 %v2308_v0 }
  0xc0   :  { %1923 = vmatmul.mubr.msk.f32.gmra.mrb[80].mxu0 %vm61_vm0, %v1050_v24 }
  0xc1   :  { %1224 = vmatprep.mubr.f32.mxu0 %v2308_v0 }
  0xc4   :  { %1924 = vmatmul.mubr.msk.f32.gmra.mrb[82].mxu0 %vm61_vm0, %v1051_v25 }
  0xc5   :  { %1230 = vmatprep.mubr.f32.mxu0 %v2308_v0 }
  0xc8   :  { %1925 = vmatmul.mubr.msk.f32.gmra.mrb[84].mxu0 %vm61_vm0, %v1052_v26  ;;  %v2144_v26 = vpack.c.bf16 %v1442_v23, %v1441_v22 }
  0xc9   :  { %1236 = vmatprep.mubr.f32.mxu0 %v2308_v0 }
  0xcc   :  { %1926 = vmatmul.mubr.msk.f32.gmra.mrb[86].mxu0 %vm61_vm0, %v1053_v27  ;;  %v1617_v27 = vld [vmem:[#allocation2 + $0x280] sm:$0xff] }
  0xcd   :  { %1242 = vmatprep.mubr.f32.mxu0 %v2308_v0 }
  0xd0   :  { %1927 = vmatmul.mubr.msk.f32.gmra.mrb[88].mxu0 %vm61_vm0, %v1054_v28  ;;  %v1618_v28 = vld [vmem:[#allocation2 + $0x288] sm:$0xff] }
  0xd1   :  { %1248 = vmatprep.mubr.f32.mxu0 %v2308_v0  ;;  %v2188_v34 = vpack.c.bf16 %v1618_v28, %v1617_v27  ;;  %v1605_v27 = vld [vmem:[#allocation2 + $0x220] sm:$0xff]  ;;  %v1606_v28 = vld [vmem:[#allocation2 + $0x228] sm:$0xff] }
  0xd3   :  { %2189 = vmatprep.subr.bf16.mxu0 %v2188_v34  ;;  %v2198_v34 = vpack.c.bf16 %v1606_v28, %v1605_v27  ;;  %v1395_v27 = vld [vmem:[#allocation2 + $0x80] sm:$0xff]  ;;  %v1396_v28 = vld [vmem:[#allocation2 + $0x88] sm:$0xff] }
  0xd4   :  { %1928 = vmatmul.mubr.msk.f32.gmra.mrb[90].mxu0 %vm61_vm0, %v1055_v29 }
  0xd5   :  { %1254 = vmatprep.mubr.f32.mxu0 %v2308_v0  ;;  %2191 = vmatpush3.bf16.msra.mxu0 %v2190_v39 }
  0xd6   :  { %2193 = vmatprep.subr.bf16.mxu0 %v2192_v46  ;;  %v1430_v46 = vld [vmem:[#allocation2 + $0x178] sm:$0xff] }
  0xd8   :  { %1929 = vmatmul.mubr.msk.f32.gmra.mrb[92].mxu0 %vm61_vm0, %v1056_v30 }
  0xd9   :  { %1260 = vmatprep.mubr.f32.mxu0 %v2308_v0  ;;  %v2132_v0 = vpack.c.bf16 %v1436_v45, %v1435_v44  ;;  %v1630_v44 = vld [vmem:[#allocation2 + $0x2e8] sm:$0xff] }
  0xdb   :  { %2133 = vmatprep.subr.bf16.mxu1 %v2132_v0 }
  0xdc   :  { %1930 = vmatmul.mubr.msk.f32.gmra.mrb[94].mxu0 %vm61_vm0, %v1057_v36  ;;  %2135 = vmatpush3.bf16.msra.mxu1 %v2134_v48  ;;  %v1604_v48 = vld [vmem:[#allocation2 + $0x218] sm:$0xff] }
  0xdd   :  { %2137 = vmatprep.subr.bf16.mxu1 %v2136_v51  ;;  %v1444_v51 = vld [vmem:[#allocation2 + $0x1e8] sm:$0xff]  ;;  %v2194_v52 = vpack.c.bf16 %v1604_v48, %v1603_v47  ;;  %v1623_v47 = vld [vmem:[#allocation2 + $0x2b0] sm:$0xff] }
  0xde   :  { %v2148_v53 = vpack.c.bf16 %v1444_v51, %v1443_v50  ;;  %v1627_v48 = vld [vmem:[#allocation2 + $0x2d0] sm:$0xff] }
  0xdf   :  { %2195 = vmatpush3.bf16.msra.mxu0 %v2194_v52  ;;  %v2154_v52 = vpack.c.bf16 %v1430_v46, %v1429_v43 }
  0xe0   :  { %2139 = vmatpush3.bf16.msra.mxu1 %v2138_v54 }
  0xe1   :  { %2141 = vmatprep.subr.bf16.mxu1 %v2140_v6  ;;  %v1428_v6 = vld [vmem:[#allocation2 + $0x168] sm:$0xff] }
  0xe2   :  { %v2150_v23 = vpack.c.bf16 %v1428_v6, %v1427_v5  ;;  %v1607_v5 = vld [vmem:[#allocation2 + $0x230] sm:$0xff]  ;;  %v1608_v6 = vld [vmem:[#allocation2 + $0x238] sm:$0xff] }
  0xe4   :  { %2143 = vmatpush3.bf16.msra.mxu1 %v2142_v15 }
  0xe5   :  { %2145 = vmatprep.subr.bf16.mxu1 %v2144_v26  ;;  %v1622_v26 = vld [vmem:[#allocation2 + $0x2a8] sm:$0xff] }
  0xe6   :  { %v2196_v33 = vpack.c.bf16 %v1622_v26, %v1621_v12  ;;  %v2202_v26 = vpack.c.bf16 %v1608_v6, %v1607_v5  ;;  %v1609_v5 = vld [vmem:[#allocation2 + $0x240] sm:$0xff]  ;;  %v1610_v6 = vld [vmem:[#allocation2 + $0x248] sm:$0xff] }
  0xe7   :  { %v2206_v12 = vpack.c.bf16 %v1610_v6, %v1609_v5  ;;  %v1612_v5 = vld [vmem:[#allocation2 + $0x258] sm:$0xff] }
  0xe8   :  { %2147 = vmatpush3.bf16.msra.mxu1 %v2146_v37  ;;  %v1446_v37 = vld [vmem:[#allocation2 + $0x1f8] sm:$0xff]  ;;  %2197 = vmatprep.subr.bf16.mxu0 %v2196_v33 }
  0xe9   :  { %2149 = vmatprep.subr.bf16.mxu1 %v2148_v53  ;;  %v2152_v42 = vpack.c.bf16 %v1446_v37, %v1445_v35  ;;  %2199 = vmatpush3.bf16.msra.mxu0 %v2198_v34  ;;  %v1624_v53 = vld [vmem:[#allocation2 + $0x2b8] sm:$0xff]  ;;  %v2156_v37 = vpack.c.bf16 %v1396_v28, %v1395_v27 }
  0xec   :  { %2151 = vmatpush3.bf16.msra.mxu1 %v2150_v23  ;;  %v2200_v23 = vpack.c.bf16 %v1624_v53, %v1623_v47  ;;  %v1626_v47 = vld [vmem:[#allocation2 + $0x2c8] sm:$0xff] }
  0xed   :  { %2153 = vmatprep.subr.bf16.mxu1 %v2152_v42  ;;  %v1625_v42 = vld [vmem:[#allocation2 + $0x2c0] sm:$0xff] }
  0xee   :  { %2201 = vmatprep.subr.bf16.mxu0 %v2200_v23  ;;  %v2204_v53 = vpack.c.bf16 %v1626_v47, %v1625_v42  ;;  %v1628_v42 = vld [vmem:[#allocation2 + $0x2d8] sm:$0xff]  ;;  %v1611_v47 = vld [vmem:[#allocation2 + $0x250] sm:$0xff] }
  0xef   :  { %2203 = vmatpush3.bf16.msra.mxu0 %v2202_v26  ;;  %v2208_v6 = vpack.c.bf16 %v1628_v42, %v1627_v48  ;;  %v1613_v48 = vld [vmem:[#allocation2 + $0x260] sm:$0xff]  ;;  %v1614_v42 = vld [vmem:[#allocation2 + $0x268] sm:$0xff] }
  0xf0   :  { %2155 = vmatpush3.bf16.msra.mxu1 %v2154_v52  ;;  %2205 = vmatprep.subr.bf16.mxu0 %v2204_v53  ;;  %v2210_v52 = vpack.c.bf16 %v1612_v5, %v1611_v47  ;;  %v2214_v5 = vpack.c.bf16 %v1614_v42, %v1613_v48 }
  0xf1   :  { %2157 = vmatprep.subr.bf16.mxu1 %v2156_v37  ;;  %v1632_v37 = vld [vmem:[#allocation2 + $0x2f8] sm:$0xff] }
  0xf2   :  { %v2216_v48 = vpack.c.bf16 %v1632_v37, %v1631_v18 }
  0xf3   :  { %v2820_v55 = vpop.f32.mrb[0].mxu0  ;;  %v2822_v56 = vpop.f32.mrb[0].mxu1  ;;  %2207 = vmatpush3.bf16.msra.mxu0 %v2206_v12  ;;  %v1629_v12 = vld [vmem:[#allocation2 + $0x2e0] sm:$0xff] }
  0xf4   :  { %v2826_v58 = vpop.f32.mrb[1].mxu0  ;;  %v2828_v59 = vpop.f32.mrb[1].mxu1  ;;  %2209 = vmatprep.subr.bf16.mxu0 %v2208_v6  ;;  %v2212_v47 = vpack.c.bf16 %v1630_v44, %v1629_v12  ;;  %v1615_v44 = vld [vmem:[#allocation2 + $0x270] sm:$0xff]  ;;  %v1616_v12 = vld [vmem:[#allocation2 + $0x278] sm:$0xff]  ;;  %v3514_v37 = vmax.f32 %v2820_v55, %v2822_v56 }
  0xf5   :  { %v2218_v42 = vpack.c.bf16 %v1616_v12, %v1615_v44  ;;  %v3515_v28 = vmax.f32 %v2826_v58, %v2828_v59 }
  0xf7   :  { %v2832_v61 = vpop.f32.mrb[2].mxu0  ;;  %v2834_v62 = vpop.f32.mrb[2].mxu1  ;;  %2211 = vmatpush3.bf16.msra.mxu0 %v2210_v52 }
  0xf8   :  { %v2838_v1 = vpop.f32.mrb[3].mxu0  ;;  %v2840_v2 = vpop.f32.mrb[3].mxu1  ;;  %2213 = vmatprep.subr.bf16.mxu0 %v2212_v47  ;;  %v3516_v55 = vmax.f32 %v2832_v61, %v2834_v62 }
  0xf9   :  { %v3517_v58 = vmax.f32 %v2838_v1, %v2840_v2 }
  0xfb   :  { %v2844_v7 = vpop.f32.mrb[4].mxu0  ;;  %v2846_v8 = vpop.f32.mrb[4].mxu1  ;;  %2215 = vmatpush3.bf16.msra.mxu0 %v2214_v5 }
  0xfc   :  { %v2850_v10 = vpop.f32.mrb[5].mxu0  ;;  %v2852_v11 = vpop.f32.mrb[5].mxu1  ;;  %2217 = vmatprep.subr.bf16.mxu0 %v2216_v48  ;;  %v3518_v61 = vmax.f32 %v2844_v7, %v2846_v8 }
  0xfd   :  { %v3519_v1 = vmax.f32 %v2850_v10, %v2852_v11 }
  0xff   :  { %v2856_v16 = vpop.f32.mrb[6].mxu0  ;;  %v2858_v17 = vpop.f32.mrb[6].mxu1  ;;  %2219 = vmatpush3.bf16.msra.mxu0 %v2218_v42 }
 0x100   :  { %v2862_v19 = vpop.f32.mrb[7].mxu0  ;;  %v2864_v20 = vpop.f32.mrb[7].mxu1  ;;  %v3520_v7 = vmax.f32 %v2856_v16, %v2858_v17 }
 0x101   :  { %v3521_v10 = vmax.f32 %v2862_v19, %v2864_v20 }
 0x103   :  { %v2868_v24 = vpop.f32.mrb[8].mxu0  ;;  %v2870_v25 = vpop.f32.mrb[8].mxu1 }
 0x104   :  { %v2874_v30 = vpop.f32.mrb[9].mxu0  ;;  %v2876_v31 = vpop.f32.mrb[9].mxu1  ;;  %v3522_v16 = vmax.f32 %v2868_v24, %v2870_v25 }
 0x105   :  { %v3523_v19 = vmax.f32 %v2874_v30, %v2876_v31 }
 0x107   :  { %v2880_v40 = vpop.f32.mrb[10].mxu0  ;;  %v2882_v41 = vpop.f32.mrb[10].mxu1 }
 0x108   :  { %v2886_v45 = vpop.f32.mrb[11].mxu0  ;;  %v2888_v0 = vpop.f32.mrb[11].mxu1  ;;  %v3524_v24 = vmax.f32 %v2880_v40, %v2882_v41 }
 0x109   :  { %v3525_v30 = vmax.f32 %v2886_v45, %v2888_v0 }
 0x10b   :  { %v2892_v54 = vpop.f32.mrb[12].mxu0  ;;  %v2894_v4 = vpop.f32.mrb[12].mxu1 }
 0x10c   :  { %v2898_v15 = vpop.f32.mrb[13].mxu0  ;;  %v2900_v22 = vpop.f32.mrb[13].mxu1  ;;  %v3526_v40 = vmax.f32 %v2892_v54, %v2894_v4 }
 0x10d   :  { %v3527_v45 = vmax.f32 %v2898_v15, %v2900_v22 }
 0x10f   :  { %v2904_v38 = vpop.f32.mrb[14].mxu0  ;;  %v2906_v39 = vpop.f32.mrb[14].mxu1 }
 0x110   :  { %v2910_v50 = vpop.f32.mrb[15].mxu0  ;;  %v2912_v51 = vpop.f32.mrb[15].mxu1  ;;  %v3528_v54 = vmax.f32 %v2904_v38, %v2906_v39 }
 0x111   :  { %v3529_v15 = vmax.f32 %v2910_v50, %v2912_v51 }
 0x113   :  { %v2916_v33 = vpop.f32.mrb[16].mxu0  ;;  %v2918_v35 = vpop.f32.mrb[16].mxu1 }
 0x114   :  { %v2922_v43 = vpop.f32.mrb[17].mxu0  ;;  %v2924_v46 = vpop.f32.mrb[17].mxu1  ;;  %v3530_v38 = vmax.f32 %v2916_v33, %v2918_v35 }
 0x115   :  { %v3531_v50 = vmax.f32 %v2922_v43, %v2924_v46 }
 0x117   :  { %v2928_v23 = vpop.f32.mrb[18].mxu0  ;;  %v2930_v27 = vpop.f32.mrb[18].mxu1 }
 0x118   :  { %v2934_v34 = vpop.f32.mrb[19].mxu0  ;;  %v2936_v26 = vpop.f32.mrb[19].mxu1  ;;  %v3532_v33 = vmax.f32 %v2928_v23, %v2930_v27 }
 0x119   :  { %v3533_v43 = vmax.f32 %v2934_v34, %v2936_v26 }
 0x11b   :  { %v2940_v32 = vpop.f32.mrb[20].mxu0  ;;  %v2942_v53 = vpop.f32.mrb[20].mxu1 }
 0x11c   :  { %v2946_v13 = vpop.f32.mrb[21].mxu0  ;;  %v2948_v49 = vpop.f32.mrb[21].mxu1  ;;  %v3534_v23 = vmax.f32 %v2940_v32, %v2942_v53 }
 0x11d   :  { %v3535_v34 = vmax.f32 %v2946_v13, %v2948_v49 }
 0x11f   :  { %v2952_v36 = vpop.f32.mrb[22].mxu0  ;;  %v2954_v29 = vpop.f32.mrb[22].mxu1 }
 0x120   :  { %v2958_v21 = vpop.f32.mrb[23].mxu0  ;;  %v2960_v6 = vpop.f32.mrb[23].mxu1  ;;  %v3537_v32 = vmax.f32 %v2952_v36, %v2954_v29 }
 0x121   :  { %v3540_v49 = vmax.f32 %v2958_v21, %v2960_v6 }
 0x123   :  { %v2964_v14 = vpop.f32.mrb[24].mxu0  ;;  %v2966_v9 = vpop.f32.mrb[24].mxu1 }
 0x124   :  { %v2970_v3 = vpop.f32.mrb[25].mxu0  ;;  %v2972_v47 = vpop.f32.mrb[25].mxu1  ;;  %v3543_v29 = vmax.f32 %v2964_v14, %v2966_v9 }
 0x125   :  { %v3546_v21 = vmax.f32 %v2970_v3, %v2972_v47 }
 0x127   :  { %v2976_v52 = vpop.f32.mrb[26].mxu0  ;;  %v2978_v18 = vpop.f32.mrb[26].mxu1 }
 0x128   :  { %3502 = vst [vmem:[#allocation8_spill] sm:$0xff] %v2976_v52  ;;  %3503 = vst [vmem:[#allocation9_spill] sm:$0xff] %v2978_v18  ;;  %v2982_v44 = vpop.f32.mrb[27].mxu0  ;;  %v2984_v12 = vpop.f32.mrb[27].mxu1 }
 0x129   :  { %3504 = vst [vmem:[#allocation10_spill] sm:$0xff] %v2982_v44  ;;  %3505 = vst [vmem:[#allocation11_spill] sm:$0xff] %v2984_v12 }
 0x12b   :  { %v2988_v63 = vpop.f32.mrb[28].mxu0  ;;  %v2990_v48 = vpop.f32.mrb[28].mxu1 }
 0x12c   :  { %3506 = vst [vmem:[#allocation12_spill] sm:$0xff] %v2988_v63  ;;  %3507 = vst [vmem:[#allocation13_spill] sm:$0xff] %v2990_v48  ;;  %v2994_v5 = vpop.f32.mrb[29].mxu0  ;;  %v2996_v60 = vpop.f32.mrb[29].mxu1 }
 0x12d   :  { %3508 = vst [vmem:[#allocation14_spill] sm:$0xff] %v2994_v5  ;;  %3509 = vst [vmem:[#allocation15_spill] sm:$0xff] %v2996_v60 }
 0x12f   :  { %v3000_v57 = vpop.f32.mrb[30].mxu0  ;;  %v3002_v18 = vpop.f32.mrb[30].mxu1  ;;  %v3549_v9 = vld [vmem:[#allocation8_spill] sm:$0xff]  ;;  %v3550_v14 = vld [vmem:[#allocation9_spill] sm:$0xff] }
 0x130   :  { %3510 = vst [vmem:[#allocation16_spill] sm:$0xff] %v3000_v57  ;;  %3511 = vst [vmem:[#allocation17_spill] sm:$0xff] %v3002_v18  ;;  %v3006_v12 = vpop.f32.mrb[31].mxu0  ;;  %v3008_v44 = vpop.f32.mrb[31].mxu1  ;;  %v3554_v3 = vld [vmem:[#allocation10_spill] sm:$0xff]  ;;  %v3555_v47 = vld [vmem:[#allocation11_spill] sm:$0xff] }
 0x131   :  { %3512 = vst [vmem:[#allocation18_spill] sm:$0xff] %v3006_v12  ;;  %3513 = vst [vmem:[#allocation19_spill] sm:$0xff] %v3008_v44 }
 0x133   :  { %v658_v48 = vpop.f32.mrb[32].mxu0  ;;  %v3012_v63 = vpop.f32.mrb[32].mxu1 }
 0x134   :  { %v3017_v60 = vmax.f32 %v3514_v37, %v658_v48  ;;  %v660_v5 = vpop.f32.mrb[33].mxu0  ;;  %v3019_v52 = vpop.f32.mrb[33].mxu1 }
 0x135   :  { %v3024_v18 = vmax.f32 %v3515_v28, %v660_v5 }
 0x137   :  { %v664_v44 = vpop.f32.mrb[34].mxu0  ;;  %v3030_v12 = vpop.f32.mrb[34].mxu1 }
 0x138   :  { %v3035_v56 = vmax.f32 %v3516_v55, %v664_v44  ;;  %v666_v37 = vpop.f32.mrb[35].mxu0  ;;  %v3037_v48 = vpop.f32.mrb[35].mxu1 }
 0x139   :  { %v3042_v59 = vmax.f32 %v3517_v58, %v666_v37 }
 0x13b   :  { %v670_v42 = vpop.f32.mrb[36].mxu0  ;;  %v3048_v57 = vpop.f32.mrb[36].mxu1 }
 0x13c   :  { %v3053_v62 = vmax.f32 %v3518_v61, %v670_v42  ;;  %v672_v44 = vpop.f32.mrb[37].mxu0  ;;  %v3055_v55 = vpop.f32.mrb[37].mxu1 }
 0x13d   :  { %v3060_v2 = vmax.f32 %v3519_v1, %v672_v44 }
 0x13f   :  { %v676_v5 = vpop.f32.mrb[38].mxu0  ;;  %v3066_v28 = vpop.f32.mrb[38].mxu1 }
 0x140   :  { %v3071_v8 = vmax.f32 %v3520_v7, %v676_v5  ;;  %v678_v42 = vpop.f32.mrb[39].mxu0  ;;  %v3073_v61 = vpop.f32.mrb[39].mxu1 }
 0x141   :  { %v3078_v11 = vmax.f32 %v3521_v10, %v678_v42 }
 0x143   :  { %v682_v58 = vpop.f32.mrb[40].mxu0  ;;  %v3084_v37 = vpop.f32.mrb[40].mxu1 }
 0x144   :  { %v3089_v17 = vmax.f32 %v3522_v16, %v682_v58  ;;  %v684_v5 = vpop.f32.mrb[41].mxu0  ;;  %v3091_v7 = vpop.f32.mrb[41].mxu1 }
 0x145   :  { %v3096_v20 = vmax.f32 %v3523_v19, %v684_v5 }
 0x147   :  { %v688_v1 = vpop.f32.mrb[42].mxu0  ;;  %v3102_v44 = vpop.f32.mrb[42].mxu1 }
 0x148   :  { %v3107_v25 = vmax.f32 %v3524_v24, %v688_v1  ;;  %v690_v58 = vpop.f32.mrb[43].mxu0  ;;  %v3109_v16 = vpop.f32.mrb[43].mxu1 }
 0x149   :  { %v3114_v31 = vmax.f32 %v3525_v30, %v690_v58 }
 0x14b   :  { %v694_v10 = vpop.f32.mrb[44].mxu0  ;;  %v3120_v42 = vpop.f32.mrb[44].mxu1 }
 0x14c   :  { %v3125_v41 = vmax.f32 %v3526_v40, %v694_v10  ;;  %v696_v1 = vpop.f32.mrb[45].mxu0  ;;  %v3127_v24 = vpop.f32.mrb[45].mxu1 }
 0x14d   :  { %v3132_v0 = vmax.f32 %v3527_v45, %v696_v1 }
 0x14f   :  { %v700_v19 = vpop.f32.mrb[46].mxu0  ;;  %v3138_v5 = vpop.f32.mrb[46].mxu1 }
 0x150   :  { %v3143_v4 = vmax.f32 %v3528_v54, %v700_v19  ;;  %v702_v10 = vpop.f32.mrb[47].mxu0  ;;  %v3145_v40 = vpop.f32.mrb[47].mxu1 }
 0x151   :  { %v3150_v22 = vmax.f32 %v3529_v15, %v702_v10 }
 0x153   :  { %v706_v30 = vpop.f32.mrb[48].mxu0  ;;  %v3156_v58 = vpop.f32.mrb[48].mxu1 }
 0x154   :  { %v3161_v39 = vmax.f32 %v3530_v38, %v706_v30  ;;  %v708_v19 = vpop.f32.mrb[49].mxu0  ;;  %v3163_v54 = vpop.f32.mrb[49].mxu1 }
 0x155   :  { %v3168_v51 = vmax.f32 %v3531_v50, %v708_v19 }
 0x157   :  { %v712_v45 = vpop.f32.mrb[50].mxu0  ;;  %v3174_v1 = vpop.f32.mrb[50].mxu1 }
 0x158   :  { %v3179_v35 = vmax.f32 %v3532_v33, %v712_v45  ;;  %v714_v30 = vpop.f32.mrb[51].mxu0  ;;  %v3181_v38 = vpop.f32.mrb[51].mxu1 }
 0x159   :  { %v3186_v46 = vmax.f32 %v3533_v43, %v714_v30 }
 0x15b   :  { %v718_v15 = vpop.f32.mrb[52].mxu0  ;;  %v3192_v10 = vpop.f32.mrb[52].mxu1 }
 0x15c   :  { %v3197_v27 = vmax.f32 %v3534_v23, %v718_v15  ;;  %v720_v45 = vpop.f32.mrb[53].mxu0  ;;  %v3199_v33 = vpop.f32.mrb[53].mxu1 }
 0x15d   :  { %v3204_v26 = vmax.f32 %v3535_v34, %v720_v45 }
 0x15f   :  { %v724_v50 = vpop.f32.mrb[54].mxu0  ;;  %v3210_v19 = vpop.f32.mrb[54].mxu1 }
 0x160   :  { %3536 = vst [vmem:[#allocation20_spill] sm:$0xff] %v3210_v19  ;;  %v3215_v53 = vmax.f32 %v3537_v32, %v724_v50  ;;  %v726_v15 = vpop.f32.mrb[55].mxu0  ;;  %v3217_v23 = vpop.f32.mrb[55].mxu1 }
 0x161   :  { %3539 = vst [vmem:[#allocation22_spill] sm:$0xff] %v3217_v23  ;;  %v3222_v13 = vmax.f32 %v3540_v49, %v726_v15  ;;  %v3576_v49 = vmax.f32 %v3035_v56, %v3030_v12  ;;  %v3579_v12 = vmax.f32 %v3060_v2, %v3055_v55  ;;  %v3581_v55 = vmax.f32 %v3078_v11, %v3073_v61 }
 0x162   :  { %3538 = vst [vmem:[#allocation21_spill] sm:$0xff] %v3215_v53  ;;  %v3583_v61 = vmax.f32 %v3096_v20, %v3091_v7  ;;  %v3586_v7 = vmax.f32 %v3125_v41, %v3120_v42  ;;  %v3588_v42 = vmax.f32 %v3143_v4, %v3138_v5 }
 0x163   :  { %3541 = vst [vmem:[#allocation23_spill] sm:$0xff] %v3222_v13  ;;  %v730_v43 = vpop.f32.mrb[56].mxu0  ;;  %v3228_v30 = vpop.f32.mrb[56].mxu1 }
 0x164   :  { %3542 = vst [vmem:[#allocation24_spill] sm:$0xff] %v3228_v30  ;;  %v3233_v36 = vmax.f32 %v3543_v29, %v730_v43  ;;  %v732_v50 = vpop.f32.mrb[57].mxu0  ;;  %v3235_v32 = vpop.f32.mrb[57].mxu1  ;;  %v3551_v43 = vmax.f32 %v3549_v9, %v3550_v14  ;;  %v3558_v9 = vld [vmem:[#allocation12_spill] sm:$0xff] }
 0x165   :  { %3545 = vst [vmem:[#allocation26_spill] sm:$0xff] %v3235_v32  ;;  %v3240_v6 = vmax.f32 %v3546_v21, %v732_v50  ;;  %v3556_v50 = vmax.f32 %v3554_v3, %v3555_v47  ;;  %v1301_v3 = vlaneseq  ;;  %v3563_v47 = vld [vmem:[#allocation15_spill] sm:$0xff] }
 0x166   :  { %3544 = vst [vmem:[#allocation25_spill] sm:$0xff] %v3233_v36 }
 0x167   :  { %3547 = vst [vmem:[#allocation27_spill] sm:$0xff] %v3240_v6  ;;  %v736_v34 = vpop.f32.mrb[58].mxu0  ;;  %v3246_v45 = vpop.f32.mrb[58].mxu1 }
 0x168   :  { %3548 = vst [vmem:[#allocation28_spill] sm:$0xff] %v3246_v45  ;;  %v3251_v29 = vmax.f32 %v3551_v43, %v736_v34  ;;  %v738_v23 = vpop.f32.mrb[59].mxu0  ;;  %v3253_v13 = vpop.f32.mrb[59].mxu1  ;;  %v3559_v34 = vld [vmem:[#allocation13_spill] sm:$0xff] }
 0x169   :  { %3553 = vst [vmem:[#allocation9_spill] sm:$0xff] %v3253_v13  ;;  %v3258_v21 = vmax.f32 %v3556_v50, %v738_v23  ;;  %v3560_v14 = vmax.f32 %v3558_v9, %v3559_v34  ;;  %v3562_v23 = vld [vmem:[#allocation14_spill] sm:$0xff]  ;;  %v3567_v9 = vld [vmem:[#allocation17_spill] sm:$0xff] }
 0x16a   :  { %3552 = vst [vmem:[#allocation8_spill] sm:$0xff] %v3251_v29  ;;  %v3564_v50 = vmax.f32 %v3562_v23, %v3563_v47  ;;  %v1302_v23 = vshrl.u32 %v1301_v3, 7  ;;  %v3571_v47 = vld [vmem:[#allocation19_spill] sm:$0xff]  ;;  %v1299_v3 = vld [vmem:[%s3470_s2] sm:$0x3] }
 0x16b   :  { %3557 = vst [vmem:[#allocation10_spill] sm:$0xff] %v3258_v21  ;;  %v742_v32 = vpop.f32.mrb[60].mxu0  ;;  %v3264_v6 = vpop.f32.mrb[60].mxu1 }
 0x16c   :  { %v3269_v43 = vmax.f32 %v3560_v14, %v742_v32  ;;  %v744_v30 = vpop.f32.mrb[61].mxu0  ;;  %v3271_v36 = vpop.f32.mrb[61].mxu1  ;;  %v3566_v32 = vld [vmem:[#allocation16_spill] sm:$0xff] }
 0x16d   :  { %3561 = vst [vmem:[#allocation11_spill] sm:$0xff] %v3271_v36  ;;  %v3276_v19 = vmax.f32 %v3564_v50, %v744_v30  ;;  %v3568_v34 = vmax.f32 %v3566_v32, %v3567_v9  ;;  %v3570_v30 = vld [vmem:[#allocation18_spill] sm:$0xff]  ;;  %v1303_v9 = vsub.s32 0, %v1302_v23 }
 0x16e   :  { %v3572_v50 = vmax.f32 %v3570_v30, %v3571_v47  ;;  %v1307_v47 = vsub.s32 1, %v1302_v23 }
 0x16f   :  { %v748_v13 = vpop.f32.mrb[62].mxu0  ;;  %v3282_v21 = vpop.f32.mrb[62].mxu1  ;;  %v3309_v15 = vrot.slane %v1299_v3, %v1303_v9 }
 0x170   :  { %3565 = vst [vmem:[#allocation12_spill] sm:$0xff] %v3282_v21  ;;  %v3287_v14 = vmax.f32 %v3568_v34, %v748_v13  ;;  %v750_v45 = vpop.f32.mrb[63].mxu0  ;;  %v3289_v29 = vpop.f32.mrb[63].mxu1  ;;  %v3574_v13 = vmax.f32 %v3017_v60, %v3012_v63  ;;  %v3314_v63 = vrot.slane %v1299_v3, %v1307_v47 }
 0x171   :  { %3569 = vst [vmem:[#allocation13_spill] sm:$0xff] %v3289_v29  ;;  %v3294_v53 = vmax.f32 %v3572_v50, %v750_v45  ;;  %v3575_v45 = vmax.f32 %v3024_v18, %v3019_v52  ;;  %v3578_v52 = vmax.f32 %v3053_v62, %v3048_v57  ;;  %v3580_v57 = vmax.f32 %v3071_v8, %v3066_v28 }
 0x173   :  { %3573 = vst [vmem:[#allocation14_spill] sm:$0xff] %v3294_v53  ;;  %v1172_v36 = vpop.f32.mrb[64].mxu0 }
 0x174   :  { %v1267_v32 = vmax.f32 %v3574_v13, %v1172_v36  ;;  %v1174_v34 = vpop.f32.mrb[65].mxu0  ;;  %v3577_v36 = vmax.f32 %v3042_v59, %v3037_v48 }
 0x175   :  { %v1268_v30 = vmax.f32 %v3575_v45, %v1174_v34 }
 0x176   :  { %v1311_v21 = vadd.f32 %v3309_v15, %v1267_v32 }
 0x177   :  { %v1178_v50 = vpop.f32.mrb[66].mxu0  ;;  %v1312_v9 = vadd.f32 %v3314_v63, %v1268_v30 }
 0x178   :  { %v1269_v29 = vmax.f32 %v3576_v49, %v1178_v50  ;;  %v1180_v60 = vpop.f32.mrb[67].mxu0  ;;  %v1343_v59 = vmax.f32 %v1311_v21, 0.0 }
 0x179   :  { %v1270_v13 = vmax.f32 %v3577_v36, %v1180_v60  ;;  %v1344_v45 = vmax.f32 %v1312_v9, 0.0 }
 0x17a   :  { %v1313_v3 = vadd.f32 %v3309_v15, %v1269_v29 }
 0x17b   :  { %v1184_v53 = vpop.f32.mrb[68].mxu0  ;;  %v1314_v30 = vadd.f32 %v3314_v63, %v1270_v13 }
 0x17c   :  { %v1271_v18 = vmax.f32 %v3578_v52, %v1184_v53  ;;  %v1186_v23 = vpop.f32.mrb[69].mxu0  ;;  %v1345_v28 = vmax.f32 %v1313_v3, 0.0  ;;  %v3582_v52 = vmax.f32 %v3089_v17, %v3084_v37  ;;  %v3585_v37 = vmax.f32 %v3114_v31, %v3109_v16 }
 0x17d   :  { %v1272_v56 = vmax.f32 %v3579_v12, %v1186_v23  ;;  %v1346_v23 = vmax.f32 %v1314_v30, 0.0 }
 0x17e   :  { %v1315_v49 = vadd.f32 %v3309_v15, %v1271_v18 }
 0x17f   :  { %v1316_v34 = vadd.f32 %v3314_v63, %v1272_v56  ;;  %v1190_v48 = vpop.f32.mrb[70].mxu0 }
 0x180   :  { %v1347_v32 = vmax.f32 %v1315_v49, 0.0  ;;  %v1273_v62 = vmax.f32 %v3580_v57, %v1190_v48  ;;  %v1192_v53 = vpop.f32.mrb[71].mxu0 }
 0x181   :  { %v1348_v47 = vmax.f32 %v1316_v34, 0.0  ;;  %v1274_v2 = vmax.f32 %v3581_v55, %v1192_v53  ;;  %v3584_v34 = vmax.f32 %v3107_v25, %v3102_v44  ;;  %v3587_v53 = vmax.f32 %v3132_v0, %v3127_v24 }
 0x182   :  { %v3337_v50 = vadd.f32 %v1347_v32, %v1343_v59  ;;  %v1317_v21 = vadd.f32 %v3309_v15, %v1273_v62 }
 0x183   :  { %v1318_v29 = vadd.f32 %v3314_v63, %v1274_v2  ;;  %v1196_v60 = vpop.f32.mrb[72].mxu0  ;;  %v3341_v36 = vadd.f32 %v1348_v47, %v1344_v45  ;;  %v1379_v2 = vld [vmem:[#allocation2] sm:$0xff] }
 0x184   :  { %v1349_v8 = vmax.f32 %v1317_v21, 0.0  ;;  %v1275_v13 = vmax.f32 %v3582_v52, %v1196_v60  ;;  %v1198_v18 = vpop.f32.mrb[73].mxu0  ;;  %v1380_v21 = vld [vmem:[#allocation2 + $0x8] sm:$0xff]  ;;  %v3589_v60 = vmax.f32 %v3150_v22, %v3145_v40  ;;  %v1398_v52 = vld [vmem:[#allocation2 + $0x98] sm:$0xff]  ;;  %v1381_v40 = vld [vmem:[#allocation2 + $0x10] sm:$0xff] }
 0x185   :  { %v1350_v9 = vmax.f32 %v1318_v29, 0.0  ;;  %v1276_v11 = vmax.f32 %v3583_v61, %v1198_v18  ;;  %v1382_v22 = vld [vmem:[#allocation2 + $0x18] sm:$0xff] }
 0x186   :  { %v3349_v12 = vadd.f32 %v1349_v8, %v1345_v28  ;;  %v1319_v32 = vadd.f32 %v3309_v15, %v1275_v13  ;;  %v1397_v8 = vld [vmem:[#allocation2 + $0x90] sm:$0xff] }
 0x187   :  { %v1202_v56 = vpop.f32.mrb[74].mxu0  ;;  %v3351_v49 = vadd.f32 %v1350_v9, %v1346_v23  ;;  %v1320_v62 = vadd.f32 %v3314_v63, %v1276_v11  ;;  %v2158_v9 = vpack.c.bf16 %v1380_v21, %v1379_v2 }
 0x188   :  { %v1277_v48 = vmax.f32 %v3584_v34, %v1202_v56  ;;  %v1204_v59 = vpop.f32.mrb[75].mxu0  ;;  %v1351_v31 = vmax.f32 %v1319_v32, 0.0  ;;  %v3590_v56 = vmax.f32 %v3161_v39, %v3156_v58  ;;  %v2162_v58 = vpack.c.bf16 %v1382_v22, %v1381_v40  ;;  %v3600_v40 = vld [vmem:[#allocation22_spill] sm:$0xff] }
 0x189   :  { %v1278_v17 = vmax.f32 %v3585_v37, %v1204_v59  ;;  %v1352_v29 = vmax.f32 %v1320_v62, 0.0  ;;  %v2160_v59 = vpack.c.bf16 %v1398_v52, %v1397_v8  ;;  %v3592_v39 = vmax.f32 %v3179_v35, %v3174_v1  ;;  %v1385_v1 = vld [vmem:[#allocation2 + $0x30] sm:$0xff] }
 0x18a   :  { %v1321_v30 = vadd.f32 %v3309_v15, %v1277_v48 }
 0x18b   :  { %v1208_v3 = vpop.f32.mrb[76].mxu0  ;;  %v1322_v24 = vadd.f32 %v3314_v63, %v1278_v17 }
 0x18c   :  { %v1279_v20 = vmax.f32 %v3586_v7, %v1208_v3  ;;  %v1210_v57 = vpop.f32.mrb[77].mxu0  ;;  %v1353_v61 = vmax.f32 %v1321_v30, 0.0  ;;  %v3591_v3 = vmax.f32 %v3168_v51, %v3163_v54  ;;  %v1399_v7 = vld [vmem:[#allocation2 + $0xa0] sm:$0xff]  ;;  %v3593_v54 = vmax.f32 %v3186_v46, %v3181_v38  ;;  %v1401_v30 = vld [vmem:[#allocation2 + $0xb0] sm:$0xff]  ;;  %v1386_v46 = vld [vmem:[#allocation2 + $0x38] sm:$0xff] }
 0x18d   :  { %v1280_v44 = vmax.f32 %v3587_v53, %v1210_v57  ;;  %v1354_v37 = vmax.f32 %v1322_v24, 0.0  ;;  %v1404_v24 = vld [vmem:[#allocation2 + $0xc8] sm:$0xff] }
 0x18e   :  { %v1323_v25 = vadd.f32 %v3309_v15, %v1279_v20  ;;  %v1400_v20 = vld [vmem:[#allocation2 + $0xa8] sm:$0xff] }
 0x18f   :  { %v1324_v45 = vadd.f32 %v3314_v63, %v1280_v44  ;;  %v1214_v16 = vpop.f32.mrb[78].mxu0 }
 0x190   :  { %v1355_v47 = vmax.f32 %v1323_v25, 0.0  ;;  %v1281_v41 = vmax.f32 %v3588_v42, %v1214_v16  ;;  %v1216_v55 = vpop.f32.mrb[79].mxu0  ;;  %v1383_v16 = vld [vmem:[#allocation2 + $0x20] sm:$0xff] }
 0x191   :  { %v1356_v0 = vmax.f32 %v1324_v45, 0.0  ;;  %v1282_v28 = vmax.f32 %v3589_v60, %v1216_v55  ;;  %v2164_v45 = vpack.c.bf16 %v1400_v20, %v1399_v7  ;;  %v3594_v55 = vmax.f32 %v3197_v27, %v3192_v10 }
 0x192   :  { %v1411_v13 = vadd.f32 %v1355_v47, %v1351_v31  ;;  %v1325_v18 = vadd.f32 %v3309_v15, %v1281_v41  ;;  %v1384_v31 = vld [vmem:[#allocation2 + $0x28] sm:$0xff]  ;;  %v1402_v47 = vld [vmem:[#allocation2 + $0xb8] sm:$0xff]  ;;  %v3595_v60 = vmax.f32 %v3204_v26, %v3199_v33  ;;  %v2170_v10 = vpack.c.bf16 %v1386_v46, %v1385_v1  ;;  %v1387_v33 = vld [vmem:[#allocation2 + $0x40] sm:$0xff] }
 0x193   :  { %v1326_v23 = vadd.f32 %v3314_v63, %v1282_v28  ;;  %v1220_v5 = vpop.f32.mrb[80].mxu0  ;;  %v1412_v4 = vadd.f32 %v1356_v0, %v1352_v29  ;;  %v2166_v41 = vpack.c.bf16 %v1384_v31, %v1383_v16  ;;  %v2168_v38 = vpack.c.bf16 %v1402_v47, %v1401_v30  ;;  %v1403_v29 = vld [vmem:[#allocation2 + $0xc0] sm:$0xff]  ;;  %v1388_v26 = vld [vmem:[#allocation2 + $0x48] sm:$0xff]  ;;  %v1390_v30 = vld [vmem:[#allocation2 + $0x58] sm:$0xff] }
 0x194   :  { %v1357_v11 = vmax.f32 %v1325_v18, 0.0  ;;  %v1283_v34 = vmax.f32 %v3590_v56, %v1220_v5  ;;  %v1222_v48 = vpop.f32.mrb[81].mxu0  ;;  %v2172_v27 = vpack.c.bf16 %v1404_v24, %v1403_v29  ;;  %v3596_v5 = vld [vmem:[#allocation21_spill] sm:$0xff]  ;;  %v3606_v1 = vld [vmem:[#allocation26_spill] sm:$0xff] }
 0x195   :  { %v1358_v17 = vmax.f32 %v1326_v23, 0.0  ;;  %v1284_v32 = vmax.f32 %v3591_v3, %v1222_v48  ;;  %1511 = vmatprep.mubr.f32.mxu1 %v1412_v4  ;;  %v3597_v4 = vld [vmem:[#allocation20_spill] sm:$0xff]  ;;  %v1406_v3 = vld [vmem:[#allocation2 + $0xd8] sm:$0xff] }
 0x196   :  { %1512 = vmatmul.mubr.f32.vlgmr.msra.gmra.mrb[64].mxu1 %v1411_v13  ;;  %v1413_v57 = vadd.f32 %v1357_v11, %v1353_v61  ;;  %v1327_v35 = vadd.f32 %v3309_v15, %v1283_v34 }
 0x197   :  { %2159 = vmatpush3.bf16.msra.mxu1 %v2158_v9  ;;  %v1226_v62 = vpop.f32.mrb[82].mxu0  ;;  %v1414_v53 = vadd.f32 %v1358_v17, %v1354_v37  ;;  %v1328_v0 = vadd.f32 %v3314_v63, %v1284_v32  ;;  %v3598_v9 = vmax.f32 %v3596_v5, %v3597_v4  ;;  %v1405_v17 = vld [vmem:[#allocation2 + $0xd0] sm:$0xff] }
 0x198   :  { %v1285_v44 = vmax.f32 %v3592_v39, %v1226_v62  ;;  %v1228_v25 = vpop.f32.mrb[83].mxu0  ;;  %2161 = vmatprep.subr.bf16.mxu1 %v2160_v59  ;;  %v1359_v13 = vmax.f32 %v1327_v35, 0.0  ;;  %v3599_v59 = vld [vmem:[#allocation23_spill] sm:$0xff] }
 0x199   :  { %v1286_v51 = vmax.f32 %v3593_v54, %v1228_v25  ;;  %1516 = vmatprep.mubr.f32.mxu1 %v1414_v53  ;;  %v1360_v56 = vmax.f32 %v1328_v0, 0.0  ;;  %v3601_v22 = vmax.f32 %v3599_v59, %v3600_v40  ;;  %v2174_v53 = vpack.c.bf16 %v1388_v26, %v1387_v33  ;;  %v3603_v25 = vld [vmem:[#allocation24_spill] sm:$0xff] }
 0x19a   :  { %1517 = vmatmul.mubr.f32.gmra.mrb[66].mxu1 %v1413_v57  ;;  %v1329_v18 = vadd.f32 %v3309_v15, %v1285_v44  ;;  %v3602_v44 = vld [vmem:[#allocation25_spill] sm:$0xff]  ;;  %v2176_v54 = vpack.c.bf16 %v1406_v3, %v1405_v17  ;;  %v3615_v3 = vld [vmem:[#allocation11_spill] sm:$0xff] }
 0x19b   :  { %2163 = vmatpush3.bf16.msra.mxu1 %v2162_v58  ;;  %v1232_v42 = vpop.f32.mrb[84].mxu0  ;;  %1586 = vmatprep.mubr.f32.mxu1 %v3341_v36  ;;  %v1330_v34 = vadd.f32 %v3314_v63, %v1286_v51  ;;  %v1389_v51 = vld [vmem:[#allocation2 + $0x50] sm:$0xff] }
 0x19c   :  { %v1287_v2 = vmax.f32 %v3594_v55, %v1232_v42  ;;  %v1234_v21 = vpop.f32.mrb[85].mxu0  ;;  %2165 = vmatprep.subr.bf16.mxu1 %v2164_v45  ;;  %v1361_v58 = vmax.f32 %v1329_v18, 0.0  ;;  %v3604_v45 = vmax.f32 %v3602_v44, %v3603_v25  ;;  %v2178_v0 = vpack.c.bf16 %v1390_v30, %v1389_v51  ;;  %v3611_v18 = vld [vmem:[#allocation10_spill] sm:$0xff]  ;;  %v3617_v44 = vld [vmem:[#allocation12_spill] sm:$0xff] }
 0x19d   :  { %v1288_v36 = vmax.f32 %v3595_v60, %v1234_v21  ;;  %v1362_v47 = vmax.f32 %v1330_v34, 0.0  ;;  %v1408_v21 = vld [vmem:[#allocation2 + $0xe8] sm:$0xff]  ;;  %v3608_v60 = vld [vmem:[#allocation8_spill] sm:$0xff]  ;;  %v3614_v34 = vmax.f32 %v3269_v43, %v3264_v6  ;;  %v3618_v25 = vmax.f32 %v3287_v14, %v3617_v44  ;;  %v1729_v44 = vld [vmem:[#allocation2 + $0x378] sm:$0xff] }
 0x19e   :  { %v1331_v28 = vadd.f32 %v3309_v15, %v1287_v2  ;;  %v1407_v2 = vld [vmem:[#allocation2 + $0xe0] sm:$0xff] }
 0x19f   :  { %v1332_v8 = vadd.f32 %v3314_v63, %v1288_v36  ;;  %2167 = vmatpush3.bf16.msra.mxu1 %v2166_v41  ;;  %v1238_v52 = vpop.f32.mrb[86].mxu0  ;;  %v3605_v41 = vld [vmem:[#allocation27_spill] sm:$0xff]  ;;  %v3609_v36 = vld [vmem:[#allocation28_spill] sm:$0xff] }
 0x1a0   :  { %v1363_v23 = vmax.f32 %v1331_v28, 0.0  ;;  %v1289_v61 = vmax.f32 %v3598_v9, %v1238_v52  ;;  %v1240_v11 = vpop.f32.mrb[87].mxu0  ;;  %2169 = vmatprep.subr.bf16.mxu1 %v2168_v38  ;;  %v3607_v35 = vmax.f32 %v3605_v41, %v3606_v1  ;;  %v3610_v28 = vmax.f32 %v3608_v60, %v3609_v36  ;;  %v1409_v9 = vld [vmem:[#allocation2 + $0xf0] sm:$0xff]  ;;  %v1717_v36 = vld [vmem:[#allocation2 + $0x318] sm:$0xff] }
 0x1a1   :  { %v1364_v48 = vmax.f32 %v1332_v8, 0.0  ;;  %v1290_v37 = vmax.f32 %v3601_v22, %v1240_v11  ;;  %v1393_v22 = vld [vmem:[#allocation2 + $0x70] sm:$0xff] }
 0x1a2   :  { %v1597_v32 = vadd.f32 %v1363_v23, %v1359_v13  ;;  %v1333_v7 = vadd.f32 %v3309_v15, %v1289_v61  ;;  %v1392_v13 = vld [vmem:[#allocation2 + $0x68] sm:$0xff]  ;;  %v3612_v23 = vld [vmem:[#allocation9_spill] sm:$0xff]  ;;  %v1716_v60 = vld [vmem:[#allocation2 + $0x310] sm:$0xff] }
 0x1a3   :  { %v1334_v20 = vadd.f32 %v3314_v63, %v1290_v37  ;;  %2171 = vmatpush3.bf16.msra.mxu1 %v2170_v10  ;;  %v1244_v57 = vpop.f32.mrb[88].mxu0  ;;  %v1598_v62 = vadd.f32 %v1364_v48, %v1360_v56  ;;  %v2180_v10 = vpack.c.bf16 %v1408_v21, %v1407_v2  ;;  %v3613_v5 = vmax.f32 %v3611_v18, %v3612_v23  ;;  %v1410_v61 = vld [vmem:[#allocation2 + $0xf8] sm:$0xff]  ;;  %v1718_v18 = vld [vmem:[#allocation2 + $0x320] sm:$0xff]  ;;  %v1719_v23 = vld [vmem:[#allocation2 + $0x328] sm:$0xff] }
 0x1a4   :  { %v1365_v39 = vmax.f32 %v1333_v7, 0.0  ;;  %v1291_v16 = vmax.f32 %v3604_v45, %v1244_v57  ;;  %v1246_v31 = vpop.f32.mrb[89].mxu0  ;;  %2173 = vmatprep.subr.bf16.mxu1 %v2172_v27  ;;  %v1391_v27 = vld [vmem:[#allocation2 + $0x60] sm:$0xff]  ;;  %v2184_v40 = vpack.c.bf16 %v1410_v61, %v1409_v9  ;;  %v1394_v37 = vld [vmem:[#allocation2 + $0x78] sm:$0xff]  ;;  %v1731_v57 = vld [vmem:[#allocation2 + $0x388] sm:$0xff]  ;;  %v2230_v9 = vpack.c.bf16 %v1719_v23, %v1718_v18 }
 0x1a5   :  { %v1366_v42 = vmax.f32 %v1334_v20, 0.0  ;;  %v1292_v55 = vmax.f32 %v3607_v35, %v1246_v31  ;;  %1697 = vmatprep.mubr.f32.mxu0 %v1598_v62  ;;  %v2182_v56 = vpack.c.bf16 %v1392_v13, %v1391_v27  ;;  %v1730_v20 = vld [vmem:[#allocation2 + $0x380] sm:$0xff]  ;;  %v2186_v43 = vpack.c.bf16 %v1394_v37, %v1393_v22  ;;  %v1732_v35 = vld [vmem:[#allocation2 + $0x390] sm:$0xff] }
 0x1a6   :  { %v1335_v38 = vadd.f32 %v3309_v15, %v1291_v16  ;;  %1698 = vmatmul.mubr.f32.vlgmr.msra.gmra.mrb[96].mxu0 %v1597_v32  ;;  %v1599_v46 = vadd.f32 %v1365_v39, %v1361_v58  ;;  %v3616_v32 = vmax.f32 %v3276_v19, %v3615_v3  ;;  %v2220_v31 = vpack.c.bf16 %v1731_v57, %v1730_v20  ;;  %v1714_v19 = vld [vmem:[#allocation2 + $0x300] sm:$0xff]  ;;  %v1724_v37 = vld [vmem:[#allocation2 + $0x350] sm:$0xff] }
 0x1a7   :  { %2175 = vmatpush3.bf16.msra.mxu1 %v2174_v53  ;;  %v1250_v29 = vpop.f32.mrb[90].mxu0  ;;  %v1600_v24 = vadd.f32 %v1366_v42, %v1362_v47  ;;  %v1336_v17 = vadd.f32 %v3314_v63, %v1292_v55  ;;  %v3619_v47 = vld [vmem:[#allocation14_spill] sm:$0xff]  ;;  %v3620_v42 = vld [vmem:[#allocation13_spill] sm:$0xff] }
 0x1a8   :  { %v1293_v8 = vmax.f32 %v3610_v28, %v1250_v29  ;;  %v1252_v52 = vpop.f32.mrb[91].mxu0  ;;  %2177 = vmatprep.subr.bf16.mxu1 %v2176_v54  ;;  %v1367_v58 = vmax.f32 %v1335_v38, 0.0  ;;  %v1715_v54 = vld [vmem:[#allocation2 + $0x308] sm:$0xff]  ;;  %v3621_v41 = vmax.f32 %v3619_v47, %v3620_v42  ;;  %v1733_v55 = vld [vmem:[#allocation2 + $0x398] sm:$0xff]  ;;  %v1742_v3 = vld [vmem:[#allocation2 + $0x3e0] sm:$0xff] }
 0x1a9   :  { %v1294_v4 = vmax.f32 %v3613_v5, %v1252_v52  ;;  %1702 = vmatprep.mubr.f32.mxu0 %v1600_v24  ;;  %v1368_v51 = vmax.f32 %v1336_v17, 0.0  ;;  %v2222_v38 = vpack.c.bf16 %v1715_v54, %v1714_v19  ;;  %v1734_v52 = vld [vmem:[#allocation2 + $0x3a0] sm:$0xff]  ;;  %v1736_v5 = vld [vmem:[#allocation2 + $0x3b0] sm:$0xff]  ;;  %v1725_v17 = vld [vmem:[#allocation2 + $0x358] sm:$0xff] }
 0x1aa   :  { %v1337_v11 = vadd.f32 %v3309_v15, %v1293_v8  ;;  %1703 = vmatmul.mubr.f32.gmra.mrb[98].mxu0 %v1599_v46  ;;  %v1726_v57 = vld [vmem:[#allocation2 + $0x360] sm:$0xff] }
 0x1ab   :  { %v1338_v33 = vadd.f32 %v3314_v63, %v1294_v4  ;;  %2179 = vmatpush3.bf16.msra.mxu1 %v2178_v0  ;;  %v1256_v26 = vpop.f32.mrb[92].mxu0  ;;  %v2224_v0 = vpack.c.bf16 %v1733_v55, %v1732_v35  ;;  %v1737_v4 = vld [vmem:[#allocation2 + $0x3b8] sm:$0xff] }
 0x1ac   :  { %v1295_v48 = vmax.f32 %v3614_v34, %v1256_v26  ;;  %v1258_v59 = vpop.f32.mrb[93].mxu0  ;;  %2181 = vmatprep.subr.bf16.mxu1 %v2180_v10  ;;  %v1369_v29 = vmax.f32 %v1337_v11, 0.0  ;;  %v1735_v10 = vld [vmem:[#allocation2 + $0x3a8] sm:$0xff]  ;;  %v2232_v61 = vpack.c.bf16 %v1737_v4, %v1736_v5  ;;  %v1721_v11 = vld [vmem:[#allocation2 + $0x338] sm:$0xff]  ;;  %v1722_v34 = vld [vmem:[#allocation2 + $0x340] sm:$0xff] }
 0x1ad   :  { %v1296_v7 = vmax.f32 %v3616_v32, %v1258_v59  ;;  %v1370_v28 = vmax.f32 %v1338_v33, 0.0  ;;  %v2228_v13 = vpack.c.bf16 %v1735_v10, %v1734_v52  ;;  %v1738_v33 = vld [vmem:[#allocation2 + $0x3c0] sm:$0xff]  ;;  %v1740_v59 = vld [vmem:[#allocation2 + $0x3d0] sm:$0xff]  ;;  %v1743_v32 = vld [vmem:[#allocation2 + $0x3e8] sm:$0xff] }
 0x1ae   :  { %v1339_v62 = vadd.f32 %v3309_v15, %v1295_v48  ;;  %v1723_v48 = vld [vmem:[#allocation2 + $0x348] sm:$0xff]  ;;  %v2244_v20 = vpack.c.bf16 %v1743_v32, %v1742_v3  ;;  %v1931_v52 = vld [vmem:[%s3472_s4] ss:$0 sm:$0xff] }
 0x1af   :  { %v1340_v53 = vadd.f32 %v3314_v63, %v1296_v7  ;;  %2183 = vmatpush3.bf16.msra.mxu1 %v2182_v56  ;;  %v1262_v6 = vpop.f32.mrb[94].mxu0  ;;  %v2238_v22 = vpack.c.bf16 %v1723_v48, %v1722_v34  ;;  %v2242_v7 = vpack.c.bf16 %v1725_v17, %v1724_v37 }
 0x1b0   :  { %v1371_v39 = vmax.f32 %v1339_v62, 0.0  ;;  %v1297_v45 = vmax.f32 %v3618_v25, %v1262_v6  ;;  %v1264_v16 = vpop.f32.mrb[95].mxu0  ;;  %2185 = vmatprep.subr.bf16.mxu1 %v2184_v40  ;;  %v1741_v40 = vld [vmem:[#allocation2 + $0x3d8] sm:$0xff]  ;;  %v1727_v62 = vld [vmem:[#allocation2 + $0x368] sm:$0xff] }
 0x1b1   :  { %v1372_v30 = vmax.f32 %v1340_v53, 0.0  ;;  %v1298_v1 = vmax.f32 %v3621_v41, %v1264_v16  ;;  %v1744_v53 = vld [vmem:[#allocation2 + $0x3f0] sm:$0xff]  ;;  %v1745_v6 = vld [vmem:[#allocation2 + $0x3f8] sm:$0xff] }
 0x1b2   :  { %v3442_v2 = vadd.f32 %v1371_v39, %v1367_v58  ;;  %v1341_v21 = vadd.f32 %v3309_v15, %v1297_v45  ;;  %v2226_v15 = vpack.c.bf16 %v1717_v36, %v1716_v60  ;;  %v2248_v58 = vpack.c.bf16 %v1745_v6, %v1744_v53  ;;  %v1728_v39 = vld [vmem:[#allocation2 + $0x370] sm:$0xff] }
 0x1b3   :  { %v1342_v14 = vadd.f32 %v3314_v63, %v1298_v1  ;;  %2187 = vmatpush3.bf16.msra.mxu1 %v2186_v43  ;;  %v1711_v46 = vadd.f32 %v1372_v30, %v1368_v51  ;;  %v2246_v43 = vpack.c.bf16 %v1727_v62, %v1726_v57  ;;  %v2250_v25 = vpack.c.bf16 %v1729_v44, %v1728_v39 }
 0x1b4   :  { %v1373_v24 = vmax.f32 %v1341_v21, 0.0  ;;  %2221 = vmatprep.subr.bf16.mxu1 %v2220_v31 }
 0x1b5   :  { %v1374_v8 = vmax.f32 %v1342_v14, 0.0 }
 0x1b6   :  { %1587 = vmatmul.mubr.f32.vlgmr.msra.gmra.mrb[68].mxu1 %v3337_v50  ;;  %v1712_v27 = vadd.f32 %v1373_v24, %v1369_v29  ;;  %v1720_v50 = vld [vmem:[#allocation2 + $0x330] sm:$0xff] }
 0x1b7   :  { %1591 = vmatprep.mubr.f32.mxu1 %v3351_v49  ;;  %2223 = vmatpush3.bf16.msra.mxu1 %v2222_v38  ;;  %v1713_v63 = vadd.f32 %v1374_v8, %v1370_v28  ;;  %v1739_v49 = vld [vmem:[#allocation2 + $0x3c8] sm:$0xff]  ;;  %v2234_v26 = vpack.c.bf16 %v1721_v11, %v1720_v50 }
 0x1b8   :  { %2225 = vmatprep.subr.bf16.mxu1 %v2224_v0  ;;  %v2236_v56 = vpack.c.bf16 %v1739_v49, %v1738_v33 }
 0x1ba   :  { %1592 = vmatmul.mubr.f32.gmra.mrb[70].mxu1 %v3349_v12  ;;  %v2240_v12 = vpack.c.bf16 %v1741_v40, %v1740_v59 }
 0x1bb   :  { %2227 = vmatpush3.bf16.msra.mxu1 %v2226_v15  ;;  %1810 = vmatprep.mubr.f32.mxu1 %v1711_v46 }
 0x1bc   :  { %2229 = vmatprep.subr.bf16.mxu1 %v2228_v13 }
 0x1bf   :  { %2231 = vmatpush3.bf16.msra.mxu1 %v2230_v9 }
 0x1c0   :  { %2233 = vmatprep.subr.bf16.mxu1 %v2232_v61 }
 0x1c3   :  { %2235 = vmatpush3.bf16.msra.mxu1 %v2234_v26 }
 0x1c4   :  { %2237 = vmatprep.subr.bf16.mxu1 %v2236_v56 }
 0x1c7   :  { %2239 = vmatpush3.bf16.msra.mxu1 %v2238_v22 }
 0x1c8   :  { %2241 = vmatprep.subr.bf16.mxu1 %v2240_v12 }
 0x1cb   :  { %2243 = vmatpush3.bf16.msra.mxu1 %v2242_v7 }
 0x1cc   :  { %2245 = vmatprep.subr.bf16.mxu1 %v2244_v20 }
 0x1cf   :  { %2247 = vmatpush3.bf16.msra.mxu1 %v2246_v43 }
 0x1d0   :  { %2249 = vmatprep.subr.bf16.mxu1 %v2248_v58 }
 0x1d3   :  { %2251 = vmatpush3.bf16.msra.mxu1 %v2250_v25 }
 0x1d6   :  { %1811 = vmatmul.mubr.f32.vlgmr.msra.gmra.mrb[72].mxu1 %v3442_v2 }
 0x1d7   :  { %1815 = vmatprep.mubr.f32.mxu1 %v1713_v63 }
 0x1da   :  { %1816 = vmatmul.mubr.f32.gmra.mrb[74].mxu1 %v1712_v27 }
 0x269   :  { %v1964_v45 = vpop.f32.mrb[64].mxu1 }
 0x26a   :  { %v1965_v16 = vpop.f32.mrb[65].mxu1 }
 0x26b   :  { %v1966_v31 = vadd.f32 %v1965_v16, %v1964_v45 }
 0x26d   :  { %v1967_v19 = vpop.f32.mrb[66].mxu1 }
 0x26e   :  { %v1968_v54 = vpop.f32.mrb[67].mxu1 }
 0x26f   :  { %v1969_v51 = vadd.f32 %v1968_v54, %v1967_v19 }
 0x279   :  { %v2040_v30 = vpop.f32.mrb[96].mxu0 }
 0x27a   :  { %v2041_v47 = vpop.f32.mrb[97].mxu0 }
 0x27b   :  { %v2042_v42 = vadd.f32 %v2041_v47, %v2040_v30 }
 0x27d   :  { %v2043_v41 = vpop.f32.mrb[98].mxu0 }
 0x27e   :  { %v2044_v1 = vpop.f32.mrb[99].mxu0 }
 0x27f   :  { %v2045_v35 = vadd.f32 %v2044_v1, %v2043_v41 }
 0x289   :  { %v2002_v55 = vpop.f32.mrb[68].mxu1 }
 0x28a   :  { %v2003_v21 = vpop.f32.mrb[69].mxu1 }
 0x28b   :  { %v2004_v14 = vadd.f32 %v2003_v21, %v2002_v55 }
 0x28d   :  { %v1589_v38 = vadd.f32 %v2004_v14, %v1966_v31  ;;  %v2005_v46 = vpop.f32.mrb[70].mxu1 }
 0x28e   :  { %v2006_v2 = vpop.f32.mrb[71].mxu1 }
 0x28f   :  { %v2007_v29 = vadd.f32 %v2006_v2, %v2005_v46  ;;  %v1708_v24 = vadd.f32 %v2042_v42, %v1589_v38 }
 0x291   :  { %v1594_v0 = vadd.f32 %v2007_v29, %v1969_v51 }
 0x293   :  { %v1709_v60 = vadd.f32 %v2045_v35, %v1594_v0 }
 0x2a9   :  { %v2078_v36 = vpop.f32.mrb[72].mxu1 }
 0x2aa   :  { %v2079_v28 = vpop.f32.mrb[73].mxu1 }
 0x2ab   :  { %v2080_v8 = vadd.f32 %v2079_v28, %v2078_v36 }
 0x2ad   :  { %v1821_v10 = vadd.f32 %v2080_v8, %v1708_v24  ;;  %v2081_v27 = vpop.f32.mrb[74].mxu1 }
 0x2ae   :  { %v2082_v15 = vpop.f32.mrb[75].mxu1 }
 0x2af   :  { %v1830_v63 = vadd.f32 %v1931_v52, %v1821_v10  ;;  %v2083_v13 = vadd.f32 %v2082_v15, %v2081_v27 }
 0x2b1   :  { %1832 = vst [vmem:[#allocation5] sm:$0xff] %v1830_v63  ;;  %v1822_v18 = vadd.f32 %v2083_v13, %v1709_v60 }
 0x2b3   :  { %v1831_v23 = vadd.f32 %v1931_v52, %v1822_v18 }
 0x2b5   :  { %1833 = vst [vmem:[#allocation5 + $0x8] sm:$0xff] %v1831_v23 }
 0x2b6   :  { %2290 = shalt.err (!%p2287_p12)
}
 0x2b7   :  { %s2291_s17 = scalar_lea.hbm %s3473_s5, 256 }
 0x2b8   :  { %p2292_p13 = scmp.ne.s32.totalorder %s3473_s5, %s2291_s17  ;;  %p2295_p0 = scmp.lt.u32.totalorder %s2291_s17, %s3473_s5 }
 0x2ba   :  { %p2297_p1 = pnand %p2295_p0, %p2292_p13 }
 0x2bc   :  { %2300 = shalt.err (!%p2297_p1)
}
 0x2bd   :  { %1845 = dma.vmem_to_hbm [thread:$0]  %s1840_s14, 256, %s3473_s5, [#allocation4], %s2306_s28, %s2306_s28, %s2307_s29  }
 0x2be   :  { %2303 = dma.done.wait [#allocation4], 256  }
 0x2bf   :  { %2304 = vsyncadd [#allocation4], 4294967040 }
 0x2c0   :  { %1849 = vsyncpa [#allocation3], 1 }
 0x2c1   :  { %1850 = vsyncpa [#allocation4], 1 }

</bundles_post_ra>
